<compile_context>
chip_gen: v7x
topology: tpu7x:2x2x1
jax: 0.10.0
libtpu: 0.0.40
codegen_flags: <defaults>
</compile_context>

<pallas_src>
import functools

import jax
import jax.numpy as jnp
from jax.experimental import pallas as pl


# ---------------------------------------------------------------------------
# shared helpers
# ---------------------------------------------------------------------------
def _layernorm(x, w, b, eps=1e-5):
    mu = jnp.mean(x, axis=-1, keepdims=True)
    var = jnp.mean((x - mu) ** 2, axis=-1, keepdims=True)
    return (x - mu) * jax.lax.rsqrt(var + eps) * w + b


def sinusoidal_embedding(n_channels, dim, padding_idx=False):
    # matches MaskedTransformerClassifier.sinusoidal_embedding
    p = jnp.arange(n_channels, dtype=jnp.float32)[:, None]
    i = jnp.arange(dim, dtype=jnp.float32)[None, :]
    pe = p / jnp.power(10000.0, 2.0 * jnp.floor(i / 2.0) / dim)
    pe = jnp.where((jnp.arange(dim) % 2) == 0, jnp.sin(pe), jnp.cos(pe))
    pe = pe[None]                                             # (1, n, dim)
    if padding_idx:
        pe = jnp.concatenate([jnp.zeros((1, 1, dim), jnp.float32), pe], axis=1)
    return pe


# ---------------------------------------------------------------------------
# fused Pallas kernel: pos-emb add + all encoder layers + norm + seq-pool + fc
# ---------------------------------------------------------------------------
def fused_forward_kernel(x_ref, pos_ref, vecd_ref, vecf_ref, wqkv_ref, wproj_ref,
                         w1_ref, w2_ref, fcw_ref, fcb_ref, out_ref,
                         *, num_layers, num_heads):
    B, N, D = x_ref.shape
    H = num_heads
    hd = D // H
    NEG = jnp.float32(-1e30)          # large finite negative (robust vs. -inf)

    # positional-embedding add, then fold batch into rows: (B*N, D)
    x = (x_ref[...] + pos_ref[...]).reshape(B * N, D)

    vd = vecd_ref[...]                # (6L+3, D) slab of LN scales / biases / pool_w
    vf = vecf_ref[...]                # (L, dff)  MLP biases b1

    row = jax.lax.broadcasted_iota(jnp.int32, (N, N), 0)
    col = jax.lax.broadcasted_iota(jnp.int32, (N, N), 1)
    diag = row == col                 # (N, N) eye mask (always applied, like the module)

    for l in range(num_layers):       # static unroll over layers (distinct weights)
        r = 6 * l
        ln0_w, ln0_b = vd[r:r + 1], vd[r + 1:r + 2]
        bproj        = vd[r + 2:r + 3]
        ln1_w, ln1_b = vd[r + 3:r + 4], vd[r + 4:r + 5]
        b2           = vd[r + 5:r + 6]
        b1           = vf[l:l + 1]                          # (1, dff)

        # ---- MaskedAttention(pre_norm(x)) -----------------------------------
        y = _layernorm(x, ln0_w, ln0_b)                      # (B*N, D)
        # ONE lane-dense QKV matmul; attention scale already folded into Q cols.
        qkv = jnp.dot(y, wqkv_ref[l], preferred_element_type=jnp.float32)   # (B*N, 3D)
        qkv = qkv.reshape(B, N, 3 * D)

        ctx_heads = []
        for h in range(H):                                   # static head loop, B-batched dots
            q_h = qkv[:, :, 0 * D + h * hd:0 * D + (h + 1) * hd]   # (B, N, hd)
            k_h = qkv[:, :, 1 * D + h * hd:1 * D + (h + 1) * hd]
            v_h = qkv[:, :, 2 * D + h * hd:2 * D + (h + 1) * hd]
            s = jax.lax.dot_general(q_h, k_h, (((2,), (2,)), ((0,), (0,))),
                                    preferred_element_type=jnp.float32)     # (B, N, N)
            s = jnp.where(diag, NEG, s)                      # masked_fill(eye, -inf)
            s = s - jnp.max(s, axis=-1, keepdims=True)
            e = jnp.exp(s)
            p = e * pl.reciprocal(jnp.sum(e, axis=-1, keepdims=True), approx=True)
            ctx_heads.append(
                jax.lax.dot_general(p, v_h, (((2,), (1,)), ((0,), (0,))),
                                    preferred_element_type=jnp.float32))    # (B, N, hd)
        # head re-concat packed into lanes, then ONE lane-dense output projection
        ctx = jnp.concatenate(ctx_heads, axis=-1).reshape(B * N, D)
        attn_out = jnp.dot(ctx, wproj_ref[l], preferred_element_type=jnp.float32) + bproj

        # ---- residual + norm1 + MLP + residual -------------------------------
        x = x + attn_out
        x = _layernorm(x, ln1_w, ln1_b)
        h1 = jnp.dot(x, w1_ref[l], preferred_element_type=jnp.float32) + b1
        h1 = jax.nn.gelu(h1, approximate=True)               # tanh form -> EUP slot
        x = x + jnp.dot(h1, w2_ref[l], preferred_element_type=jnp.float32) + b2

    # ---- final LayerNorm + seq_pool attention pooling + classifier fc --------
    r = 6 * num_layers
    norm_w, norm_b = vd[r:r + 1], vd[r + 1:r + 2]
    pool_w = vd[r + 2:r + 3]                                 # (1, D)
    xh = _layernorm(x, norm_w, norm_b).reshape(B, N, D)
    # pool bias omitted: a per-row constant cancels in the softmax below.
    logits = jnp.sum(xh * pool_w, axis=-1, keepdims=True)    # (B, N, 1)
    logits = logits - jnp.max(logits, axis=1, keepdims=True)
    e = jnp.exp(logits)
    wts = e * pl.reciprocal(jnp.sum(e, axis=1, keepdims=True), approx=True)
    pooled = jnp.sum(wts * xh, axis=1)                       # (B, D)
    # fc padded to 128 output lanes -> unmasked lane-dense store
    out_ref[...] = (jnp.dot(pooled, fcw_ref[...], preferred_element_type=jnp.float32)
                    + fcb_ref[...])


# ---------------------------------------------------------------------------
# host-side weight repack into the kernel's packed-slab layout
# ---------------------------------------------------------------------------
def pack_params(params, num_heads):
    D = params["pos_emb"].shape[-1]
    H = num_heads
    hd = D // H
    scale = float(hd ** -0.5)                                # exp(temperature)
    L = len(params["layers"])

    vec_d_rows, vec_f_rows = [], []
    wqkv_l, wproj_l, w1_l, w2_l = [], [], [], []
    for lp in params["layers"]:
        wqkv = lp["wqkv"]                                    # (D, 3D), cols = [q | k | v]
        # fold the attention scale into the Q columns (one-time, host side)
        wqkv = jnp.concatenate([wqkv[:, :D] * scale, wqkv[:, D:]], axis=1)
        wqkv_l.append(wqkv)
        wproj_l.append(lp["wproj"])                          # (D, D) lane-dense, unchanged
        w1_l.append(lp["w1"])
        w2_l.append(lp["w2"])
        vec_d_rows += [lp["ln0_w"], lp["ln0_b"], lp["bproj"],
                       lp["ln1_w"], lp["ln1_b"], lp["b2"]]
        vec_f_rows.append(lp["b1"])
    hp = params["head"]
    vec_d_rows += [hp["norm_w"], hp["norm_b"], hp["pool_w"].T]   # pool_w (D,1) -> (1,D)
    # NOTE: hp["pool_b"] is intentionally dropped (cancels inside the seq-pool softmax).
    C = hp["fc_w"].shape[1]
    CPAD = ((C + 127) // 128) * 128                          # lane-dense output
    fc_w = jnp.zeros((D, CPAD), jnp.float32).at[:, :C].set(hp["fc_w"])
    fc_b = jnp.zeros((1, CPAD), jnp.float32).at[:, :C].set(hp["fc_b"])
    return dict(
        pos_emb=params["pos_emb"],
        vec_d=jnp.concatenate(vec_d_rows, axis=0),           # (6L+3, D)
        vec_f=jnp.concatenate(vec_f_rows, axis=0),           # (L, dff)
        wqkv=jnp.stack(wqkv_l),                              # (L, D, 3D)
        wproj=jnp.stack(wproj_l),                            # (L, D, D)
        w1=jnp.stack(w1_l),                                  # (L, D, dff)
        w2=jnp.stack(w2_l),                                  # (L, dff, D)
        fc_w=fc_w, fc_b=fc_b,
        num_classes=C, num_heads=H, num_layers=L)


def masked_transformer_classifier(x, packed):
    # eval mode: dropout / attn_drop / proj_drop / drop_path are identity.
    # TODO(synk): optional boolean `mask` argument and train-mode dropout /
    # stochastic depth are not implemented (eval-mode, mask=None semantics only).
    B, N, D = x.shape
    CPAD = packed["fc_w"].shape[-1]
    kernel = functools.partial(fused_forward_kernel,
                               num_layers=packed["num_layers"],
                               num_heads=packed["num_heads"])
    # Single grid step: whole batch folded into one invocation, all operands are
    # full-array VMEM blocks (10 DMAs total instead of 34 per grid step).
    out = pl.pallas_call(
        kernel,
        out_shape=jax.ShapeDtypeStruct((B, CPAD), jnp.float32),
    )(x, packed["pos_emb"], packed["vec_d"], packed["vec_f"],
      packed["wqkv"], packed["wproj"], packed["w1"], packed["w2"],
      packed["fc_w"], packed["fc_b"])
    return out[:, :packed["num_classes"]]


# ---------------------------------------------------------------------------
# deterministic parameter init (mirrors MaskedTransformerClassifier.init_weight)
# ---------------------------------------------------------------------------
def trunc_normal(key, shape, std=0.02):
    return std * jax.random.truncated_normal(key, -2.0, 2.0, shape, dtype=jnp.float32)


def init_params(key, *, seq_len, dim, num_layers, num_heads, mlp_ratio, num_classes):
    dff = int(dim * mlp_ratio)
    layers = []
    for i in range(num_layers):
        ks = jax.random.split(jax.random.fold_in(key, i), 4)
        layers.append(dict(
            ln0_w=jnp.ones((1, dim), jnp.float32), ln0_b=jnp.zeros((1, dim), jnp.float32),
            wqkv=trunc_normal(ks[0], (dim, 3 * dim)),
            wproj=trunc_normal(ks[1], (dim, dim)), bproj=jnp.zeros((1, dim), jnp.float32),
            ln1_w=jnp.ones((1, dim), jnp.float32), ln1_b=jnp.zeros((1, dim), jnp.float32),
            w1=trunc_normal(ks[2], (dim, dff)), b1=jnp.zeros((1, dff), jnp.float32),
            w2=trunc_normal(ks[3], (dff, dim)), b2=jnp.zeros((1, dim), jnp.float32),
        ))
    hk = jax.random.split(jax.random.fold_in(key, 10_000), 2)
    head = dict(
        norm_w=jnp.ones((1, dim), jnp.float32), norm_b=jnp.zeros((1, dim), jnp.float32),
        pool_w=trunc_normal(hk[0], (dim, 1)), pool_b=jnp.zeros((1, 1), jnp.float32),
        fc_w=trunc_normal(hk[1], (dim, num_classes)), fc_b=jnp.zeros((1, num_classes), jnp.float32),
    )
    # positional_embedding='sine' with padding_idx=True -> shape (1, seq_len + 1, dim)
    pos_emb = sinusoidal_embedding(seq_len, dim, padding_idx=True)
    return dict(layers=layers, head=head, pos_emb=pos_emb)


# ---------------------------------------------------------------------------
# pure-JAX reference (same semantics as the PyTorch module) for a sanity check
# ---------------------------------------------------------------------------
def ref_forward(x, params, num_heads):
    x = x + params["pos_emb"]
    B, N, D = x.shape
    hd = D // num_heads
    scale = hd ** -0.5
    eye = jnp.eye(N, dtype=bool)
    for lp in params["layers"]:
        y = _layernorm(x, lp["ln0_w"], lp["ln0_b"])
        qkv = y @ lp["wqkv"]
        q, k, v = jnp.split(qkv, 3, axis=-1)
        q = q.reshape(B, N, num_heads, hd).transpose(0, 2, 1, 3)
        k = k.reshape(B, N, num_heads, hd).transpose(0, 2, 1, 3)
        v = v.reshape(B, N, num_heads, hd).transpose(0, 2, 1, 3)
        a = jnp.einsum('bhnd,bhmd->bhnm', q, k) * scale
        a = jnp.where(eye[None, None], -jnp.inf, a)
        p = jax.nn.softmax(a, axis=-1)
        ctx = jnp.einsum('bhnm,bhmd->bhnd', p, v).transpose(0, 2, 1, 3).reshape(B, N, D)
        x = x + (ctx @ lp["wproj"] + lp["bproj"])
        x = _layernorm(x, lp["ln1_w"], lp["ln1_b"])
        h = jax.nn.gelu(x @ lp["w1"] + lp["b1"], approximate=False)
        x = x + (h @ lp["w2"] + lp["b2"])
    hp = params["head"]
    x = _layernorm(x, hp["norm_w"], hp["norm_b"])
    logits = x @ hp["pool_w"] + hp["pool_b"]                   # (B, N, 1)
    w = jax.nn.softmax(logits, axis=1)
    pooled = jnp.einsum('bnk,bnd->bkd', w, x)[:, 0]            # (B, D)
    return pooled @ hp["fc_w"] + hp["fc_b"]


# ---------------------------------------------------------------------------
if __name__ == "__main__":
    # small config: embedding_dim=64, num_heads=4, num_layers=2, mlp_ratio=2, classes=16
    B, SEQ_LEN, DIM = 2, 7, 64
    NUM_HEADS, NUM_LAYERS, MLP_RATIO, NUM_CLASSES = 4, 2, 2.0, 16
    # sine positional embedding with padding row -> model expects seq_len + 1 tokens
    N = SEQ_LEN + 1

    key = jax.random.PRNGKey(0)
    pkey, xkey = jax.random.split(key)
    params = init_params(pkey, seq_len=SEQ_LEN, dim=DIM, num_layers=NUM_LAYERS,
                         num_heads=NUM_HEADS, mlp_ratio=MLP_RATIO, num_classes=NUM_CLASSES)
    x = jax.random.normal(xkey, (B, N, DIM), dtype=jnp.float32)

    packed = pack_params(params, NUM_HEADS)                    # one-time weight repack
    out = masked_transformer_classifier(x, packed)
    out = jax.block_until_ready(out)

    ref = ref_forward(x, params, NUM_HEADS)
    assert out.shape == (B, NUM_CLASSES)
    assert bool(jnp.all(jnp.isfinite(out)))
    assert bool(jnp.allclose(out, ref, atol=1e-2, rtol=1e-2)), (out, ref)

    print("KERNEL_OK")
</pallas_src>

<mosaic_0001>
module attributes {stable_mosaic.version = 11 : i64} {
  func.func @fused_forward_kernel(%arg0: memref<2x8x64xf32, #tpu.memory_space<vmem>>, %arg1: memref<1x8x64xf32, #tpu.memory_space<vmem>>, %arg2: memref<15x64xf32, #tpu.memory_space<vmem>>, %arg3: memref<2x128xf32, #tpu.memory_space<vmem>>, %arg4: memref<2x64x192xf32, #tpu.memory_space<vmem>>, %arg5: memref<2x64x64xf32, #tpu.memory_space<vmem>>, %arg6: memref<2x64x128xf32, #tpu.memory_space<vmem>>, %arg7: memref<2x128x64xf32, #tpu.memory_space<vmem>>, %arg8: memref<64x128xf32, #tpu.memory_space<vmem>>, %arg9: memref<1x128xf32, #tpu.memory_space<vmem>>, %arg10: memref<2x128xf32, #tpu.memory_space<vmem>>) attributes {dimension_semantics = [], scalar_prefetch = 0 : i64, scratch_operands = 0 : i64, tpu.core_type = #tpu.core_type<tc>} {
    %c0 = arith.constant 0 : index
    %c0_0 = arith.constant 0 : index
    %c0_1 = arith.constant 0 : index
    %0 = vector.load %arg0[%c0, %c0_0, %c0_1] : memref<2x8x64xf32, #tpu.memory_space<vmem>>, vector<2x8x64xf32>
    %c0_2 = arith.constant 0 : index
    %c0_3 = arith.constant 0 : index
    %c0_4 = arith.constant 0 : index
    %1 = vector.load %arg1[%c0_2, %c0_3, %c0_4] : memref<1x8x64xf32, #tpu.memory_space<vmem>>, vector<1x8x64xf32>
    %2 = vector.broadcast %1 : vector<1x8x64xf32> to vector<2x8x64xf32>
    %3 = arith.addf %0, %2 : vector<2x8x64xf32>
    %4 = vector.shape_cast %3 : vector<2x8x64xf32> to vector<16x64xf32>
    %c0_5 = arith.constant 0 : index
    %c0_6 = arith.constant 0 : index
    %5 = vector.load %arg2[%c0_5, %c0_6] : memref<15x64xf32, #tpu.memory_space<vmem>>, vector<15x64xf32>
    %c0_7 = arith.constant 0 : index
    %c0_8 = arith.constant 0 : index
    %6 = vector.load %arg3[%c0_7, %c0_8] : memref<2x128xf32, #tpu.memory_space<vmem>>, vector<2x128xf32>
    %7 = tpu.iota {dimensions = array<i32: 0>} : vector<8x8xi32>
    %8 = tpu.iota {dimensions = array<i32: 1>} : vector<8x8xi32>
    %9 = arith.cmpi eq, %7, %8 : vector<8x8xi32>
    %10 = vector.extract_strided_slice %5 {offsets = [0, 0], sizes = [1, 64], strides = [1, 1]} : vector<15x64xf32> to vector<1x64xf32>
    %11 = vector.extract_strided_slice %5 {offsets = [1, 0], sizes = [1, 64], strides = [1, 1]} : vector<15x64xf32> to vector<1x64xf32>
    %12 = vector.extract_strided_slice %5 {offsets = [2, 0], sizes = [1, 64], strides = [1, 1]} : vector<15x64xf32> to vector<1x64xf32>
    %13 = vector.extract_strided_slice %5 {offsets = [3, 0], sizes = [1, 64], strides = [1, 1]} : vector<15x64xf32> to vector<1x64xf32>
    %14 = vector.extract_strided_slice %5 {offsets = [4, 0], sizes = [1, 64], strides = [1, 1]} : vector<15x64xf32> to vector<1x64xf32>
    %15 = vector.extract_strided_slice %5 {offsets = [5, 0], sizes = [1, 64], strides = [1, 1]} : vector<15x64xf32> to vector<1x64xf32>
    %16 = vector.extract_strided_slice %6 {offsets = [0, 0], sizes = [1, 128], strides = [1, 1]} : vector<2x128xf32> to vector<1x128xf32>
    %cst = arith.constant dense<0.000000e+00> : vector<16xf32>
    %17 = vector.multi_reduction <add>, %4, %cst [1] : vector<16x64xf32> to vector<16xf32>
    %18 = vector.shape_cast %17 : vector<16xf32> to vector<16x1xf32>
    %cst_9 = arith.constant 6.400000e+01 : f32
    %19 = vector.broadcast %cst_9 : f32 to vector<16x1xf32>
    %20 = arith.divf %18, %19 : vector<16x1xf32>
    %21 = vector.broadcast %20 : vector<16x1xf32> to vector<16x64xf32>
    %22 = arith.subf %4, %21 : vector<16x64xf32>
    %23 = arith.mulf %22, %22 : vector<16x64xf32>
    %cst_10 = arith.constant dense<0.000000e+00> : vector<16xf32>
    %24 = vector.multi_reduction <add>, %23, %cst_10 [1] : vector<16x64xf32> to vector<16xf32>
    %25 = vector.shape_cast %24 : vector<16xf32> to vector<16x1xf32>
    %cst_11 = arith.constant 6.400000e+01 : f32
    %26 = vector.broadcast %cst_11 : f32 to vector<16x1xf32>
    %27 = arith.divf %25, %26 : vector<16x1xf32>
    %28 = vector.broadcast %20 : vector<16x1xf32> to vector<16x64xf32>
    %29 = arith.subf %4, %28 : vector<16x64xf32>
    %cst_12 = arith.constant 9.99999974E-6 : f32
    %30 = vector.broadcast %cst_12 : f32 to vector<16x1xf32>
    %31 = arith.addf %27, %30 : vector<16x1xf32>
    %32 = math.rsqrt %31 : vector<16x1xf32>
    %33 = vector.broadcast %32 : vector<16x1xf32> to vector<16x64xf32>
    %34 = arith.mulf %29, %33 : vector<16x64xf32>
    %35 = vector.broadcast %10 : vector<1x64xf32> to vector<16x64xf32>
    %36 = arith.mulf %34, %35 : vector<16x64xf32>
    %37 = vector.broadcast %11 : vector<1x64xf32> to vector<16x64xf32>
    %38 = arith.addf %36, %37 : vector<16x64xf32>
    %c0_13 = arith.constant 0 : index
    %c0_14 = arith.constant 0 : index
    %c0_15 = arith.constant 0 : index
    %39 = vector.load %arg4[%c0_13, %c0_14, %c0_15] : memref<2x64x192xf32, #tpu.memory_space<vmem>>, vector<1x64x192xf32>
    %40 = vector.shape_cast %39 : vector<1x64x192xf32> to vector<64x192xf32>
    %cst_16 = arith.constant dense<0.000000e+00> : vector<16x192xf32>
    %41 = tpu.matmul %38, %40, %cst_16 {dimension_numbers = #tpu.dot_dimension_numbers<[1], [0], [0], [1], [0, 0, 1, 1], [], []>} : vector<16x64xf32>, vector<64x192xf32>, vector<16x192xf32> -> vector<16x192xf32>
    %42 = vector.shape_cast %41 : vector<16x192xf32> to vector<2x8x192xf32>
    %43 = vector.extract_strided_slice %42 {offsets = [0, 0, 0], sizes = [2, 8, 16], strides = [1, 1, 1]} : vector<2x8x192xf32> to vector<2x8x16xf32>
    %44 = vector.extract_strided_slice %42 {offsets = [0, 0, 64], sizes = [2, 8, 16], strides = [1, 1, 1]} : vector<2x8x192xf32> to vector<2x8x16xf32>
    %45 = vector.extract_strided_slice %42 {offsets = [0, 0, 128], sizes = [2, 8, 16], strides = [1, 1, 1]} : vector<2x8x192xf32> to vector<2x8x16xf32>
    %cst_17 = arith.constant dense<0.000000e+00> : vector<2x8x8xf32>
    %46 = tpu.matmul %43, %44, %cst_17 {dimension_numbers = #tpu.dot_dimension_numbers<[2], [2], [1], [1], [0, 0, 0, 1, 1, 1], [0], [0]>} : vector<2x8x16xf32>, vector<2x8x16xf32>, vector<2x8x8xf32> -> vector<2x8x8xf32>
    %cst_18 = arith.constant -1.000000e+30 : f32
    %47 = vector.shape_cast %9 : vector<8x8xi1> to vector<1x8x8xi1>
    %48 = vector.broadcast %47 : vector<1x8x8xi1> to vector<2x8x8xi1>
    %49 = vector.broadcast %cst_18 : f32 to vector<2x8x8xf32>
    %50 = arith.select %48, %49, %46 : vector<2x8x8xi1>, vector<2x8x8xf32>
    %cst_19 = arith.constant dense<0xFF800000> : vector<2x8xf32>
    %51 = vector.multi_reduction <maximumf>, %50, %cst_19 [2] : vector<2x8x8xf32> to vector<2x8xf32>
    %52 = vector.shape_cast %51 : vector<2x8xf32> to vector<2x8x1xf32>
    %53 = vector.broadcast %52 : vector<2x8x1xf32> to vector<2x8x8xf32>
    %54 = arith.subf %50, %53 : vector<2x8x8xf32>
    %55 = math.exp %54 : vector<2x8x8xf32>
    %cst_20 = arith.constant dense<0.000000e+00> : vector<2x8xf32>
    %56 = vector.multi_reduction <add>, %55, %cst_20 [2] : vector<2x8x8xf32> to vector<2x8xf32>
    %57 = vector.shape_cast %56 : vector<2x8xf32> to vector<2x8x1xf32>
    %58 = tpu.reciprocal %57 {approx = true} : vector<2x8x1xf32> -> vector<2x8x1xf32>
    %59 = vector.broadcast %58 : vector<2x8x1xf32> to vector<2x8x8xf32>
    %60 = arith.mulf %55, %59 : vector<2x8x8xf32>
    %cst_21 = arith.constant dense<0.000000e+00> : vector<2x8x16xf32>
    %61 = tpu.matmul %60, %45, %cst_21 {dimension_numbers = #tpu.dot_dimension_numbers<[2], [1], [1], [2], [0, 0, 0, 1, 1, 2], [0], [0]>} : vector<2x8x8xf32>, vector<2x8x16xf32>, vector<2x8x16xf32> -> vector<2x8x16xf32>
    %62 = vector.extract_strided_slice %42 {offsets = [0, 0, 16], sizes = [2, 8, 16], strides = [1, 1, 1]} : vector<2x8x192xf32> to vector<2x8x16xf32>
    %63 = vector.extract_strided_slice %42 {offsets = [0, 0, 80], sizes = [2, 8, 16], strides = [1, 1, 1]} : vector<2x8x192xf32> to vector<2x8x16xf32>
    %64 = vector.extract_strided_slice %42 {offsets = [0, 0, 144], sizes = [2, 8, 16], strides = [1, 1, 1]} : vector<2x8x192xf32> to vector<2x8x16xf32>
    %cst_22 = arith.constant dense<0.000000e+00> : vector<2x8x8xf32>
    %65 = tpu.matmul %62, %63, %cst_22 {dimension_numbers = #tpu.dot_dimension_numbers<[2], [2], [1], [1], [0, 0, 0, 1, 1, 1], [0], [0]>} : vector<2x8x16xf32>, vector<2x8x16xf32>, vector<2x8x8xf32> -> vector<2x8x8xf32>
    %cst_23 = arith.constant -1.000000e+30 : f32
    %66 = vector.shape_cast %9 : vector<8x8xi1> to vector<1x8x8xi1>
    %67 = vector.broadcast %66 : vector<1x8x8xi1> to vector<2x8x8xi1>
    %68 = vector.broadcast %cst_23 : f32 to vector<2x8x8xf32>
    %69 = arith.select %67, %68, %65 : vector<2x8x8xi1>, vector<2x8x8xf32>
    %cst_24 = arith.constant dense<0xFF800000> : vector<2x8xf32>
    %70 = vector.multi_reduction <maximumf>, %69, %cst_24 [2] : vector<2x8x8xf32> to vector<2x8xf32>
    %71 = vector.shape_cast %70 : vector<2x8xf32> to vector<2x8x1xf32>
    %72 = vector.broadcast %71 : vector<2x8x1xf32> to vector<2x8x8xf32>
    %73 = arith.subf %69, %72 : vector<2x8x8xf32>
    %74 = math.exp %73 : vector<2x8x8xf32>
    %cst_25 = arith.constant dense<0.000000e+00> : vector<2x8xf32>
    %75 = vector.multi_reduction <add>, %74, %cst_25 [2] : vector<2x8x8xf32> to vector<2x8xf32>
    %76 = vector.shape_cast %75 : vector<2x8xf32> to vector<2x8x1xf32>
    %77 = tpu.reciprocal %76 {approx = true} : vector<2x8x1xf32> -> vector<2x8x1xf32>
    %78 = vector.broadcast %77 : vector<2x8x1xf32> to vector<2x8x8xf32>
    %79 = arith.mulf %74, %78 : vector<2x8x8xf32>
    %cst_26 = arith.constant dense<0.000000e+00> : vector<2x8x16xf32>
    %80 = tpu.matmul %79, %64, %cst_26 {dimension_numbers = #tpu.dot_dimension_numbers<[2], [1], [1], [2], [0, 0, 0, 1, 1, 2], [0], [0]>} : vector<2x8x8xf32>, vector<2x8x16xf32>, vector<2x8x16xf32> -> vector<2x8x16xf32>
    %81 = vector.extract_strided_slice %42 {offsets = [0, 0, 32], sizes = [2, 8, 16], strides = [1, 1, 1]} : vector<2x8x192xf32> to vector<2x8x16xf32>
    %82 = vector.extract_strided_slice %42 {offsets = [0, 0, 96], sizes = [2, 8, 16], strides = [1, 1, 1]} : vector<2x8x192xf32> to vector<2x8x16xf32>
    %83 = vector.extract_strided_slice %42 {offsets = [0, 0, 160], sizes = [2, 8, 16], strides = [1, 1, 1]} : vector<2x8x192xf32> to vector<2x8x16xf32>
    %cst_27 = arith.constant dense<0.000000e+00> : vector<2x8x8xf32>
    %84 = tpu.matmul %81, %82, %cst_27 {dimension_numbers = #tpu.dot_dimension_numbers<[2], [2], [1], [1], [0, 0, 0, 1, 1, 1], [0], [0]>} : vector<2x8x16xf32>, vector<2x8x16xf32>, vector<2x8x8xf32> -> vector<2x8x8xf32>
    %cst_28 = arith.constant -1.000000e+30 : f32
    %85 = vector.shape_cast %9 : vector<8x8xi1> to vector<1x8x8xi1>
    %86 = vector.broadcast %85 : vector<1x8x8xi1> to vector<2x8x8xi1>
    %87 = vector.broadcast %cst_28 : f32 to vector<2x8x8xf32>
    %88 = arith.select %86, %87, %84 : vector<2x8x8xi1>, vector<2x8x8xf32>
    %cst_29 = arith.constant dense<0xFF800000> : vector<2x8xf32>
    %89 = vector.multi_reduction <maximumf>, %88, %cst_29 [2] : vector<2x8x8xf32> to vector<2x8xf32>
    %90 = vector.shape_cast %89 : vector<2x8xf32> to vector<2x8x1xf32>
    %91 = vector.broadcast %90 : vector<2x8x1xf32> to vector<2x8x8xf32>
    %92 = arith.subf %88, %91 : vector<2x8x8xf32>
    %93 = math.exp %92 : vector<2x8x8xf32>
    %cst_30 = arith.constant dense<0.000000e+00> : vector<2x8xf32>
    %94 = vector.multi_reduction <add>, %93, %cst_30 [2] : vector<2x8x8xf32> to vector<2x8xf32>
    %95 = vector.shape_cast %94 : vector<2x8xf32> to vector<2x8x1xf32>
    %96 = tpu.reciprocal %95 {approx = true} : vector<2x8x1xf32> -> vector<2x8x1xf32>
    %97 = vector.broadcast %96 : vector<2x8x1xf32> to vector<2x8x8xf32>
    %98 = arith.mulf %93, %97 : vector<2x8x8xf32>
    %cst_31 = arith.constant dense<0.000000e+00> : vector<2x8x16xf32>
    %99 = tpu.matmul %98, %83, %cst_31 {dimension_numbers = #tpu.dot_dimension_numbers<[2], [1], [1], [2], [0, 0, 0, 1, 1, 2], [0], [0]>} : vector<2x8x8xf32>, vector<2x8x16xf32>, vector<2x8x16xf32> -> vector<2x8x16xf32>
    %100 = vector.extract_strided_slice %42 {offsets = [0, 0, 48], sizes = [2, 8, 16], strides = [1, 1, 1]} : vector<2x8x192xf32> to vector<2x8x16xf32>
    %101 = vector.extract_strided_slice %42 {offsets = [0, 0, 112], sizes = [2, 8, 16], strides = [1, 1, 1]} : vector<2x8x192xf32> to vector<2x8x16xf32>
    %102 = vector.extract_strided_slice %42 {offsets = [0, 0, 176], sizes = [2, 8, 16], strides = [1, 1, 1]} : vector<2x8x192xf32> to vector<2x8x16xf32>
    %cst_32 = arith.constant dense<0.000000e+00> : vector<2x8x8xf32>
    %103 = tpu.matmul %100, %101, %cst_32 {dimension_numbers = #tpu.dot_dimension_numbers<[2], [2], [1], [1], [0, 0, 0, 1, 1, 1], [0], [0]>} : vector<2x8x16xf32>, vector<2x8x16xf32>, vector<2x8x8xf32> -> vector<2x8x8xf32>
    %cst_33 = arith.constant -1.000000e+30 : f32
    %104 = vector.shape_cast %9 : vector<8x8xi1> to vector<1x8x8xi1>
    %105 = vector.broadcast %104 : vector<1x8x8xi1> to vector<2x8x8xi1>
    %106 = vector.broadcast %cst_33 : f32 to vector<2x8x8xf32>
    %107 = arith.select %105, %106, %103 : vector<2x8x8xi1>, vector<2x8x8xf32>
    %cst_34 = arith.constant dense<0xFF800000> : vector<2x8xf32>
    %108 = vector.multi_reduction <maximumf>, %107, %cst_34 [2] : vector<2x8x8xf32> to vector<2x8xf32>
    %109 = vector.shape_cast %108 : vector<2x8xf32> to vector<2x8x1xf32>
    %110 = vector.broadcast %109 : vector<2x8x1xf32> to vector<2x8x8xf32>
    %111 = arith.subf %107, %110 : vector<2x8x8xf32>
    %112 = math.exp %111 : vector<2x8x8xf32>
    %cst_35 = arith.constant dense<0.000000e+00> : vector<2x8xf32>
    %113 = vector.multi_reduction <add>, %112, %cst_35 [2] : vector<2x8x8xf32> to vector<2x8xf32>
    %114 = vector.shape_cast %113 : vector<2x8xf32> to vector<2x8x1xf32>
    %115 = tpu.reciprocal %114 {approx = true} : vector<2x8x1xf32> -> vector<2x8x1xf32>
    %116 = vector.broadcast %115 : vector<2x8x1xf32> to vector<2x8x8xf32>
    %117 = arith.mulf %112, %116 : vector<2x8x8xf32>
    %cst_36 = arith.constant dense<0.000000e+00> : vector<2x8x16xf32>
    %118 = tpu.matmul %117, %102, %cst_36 {dimension_numbers = #tpu.dot_dimension_numbers<[2], [1], [1], [2], [0, 0, 0, 1, 1, 2], [0], [0]>} : vector<2x8x8xf32>, vector<2x8x16xf32>, vector<2x8x16xf32> -> vector<2x8x16xf32>
    %119 = tpu.concatenate %61, %80, %99, %118 in 2 : vector<2x8x16xf32>, vector<2x8x16xf32>, vector<2x8x16xf32>, vector<2x8x16xf32> -> vector<2x8x64xf32>
    %120 = vector.shape_cast %119 : vector<2x8x64xf32> to vector<16x64xf32>
    %c0_37 = arith.constant 0 : index
    %c0_38 = arith.constant 0 : index
    %c0_39 = arith.constant 0 : index
    %121 = vector.load %arg5[%c0_37, %c0_38, %c0_39] : memref<2x64x64xf32, #tpu.memory_space<vmem>>, vector<1x64x64xf32>
    %122 = vector.shape_cast %121 : vector<1x64x64xf32> to vector<64x64xf32>
    %cst_40 = arith.constant dense<0.000000e+00> : vector<16x64xf32>
    %123 = tpu.matmul %120, %122, %cst_40 {dimension_numbers = #tpu.dot_dimension_numbers<[1], [0], [0], [1], [0, 0, 1, 1], [], []>} : vector<16x64xf32>, vector<64x64xf32>, vector<16x64xf32> -> vector<16x64xf32>
    %124 = vector.broadcast %12 : vector<1x64xf32> to vector<16x64xf32>
    %125 = arith.addf %123, %124 : vector<16x64xf32>
    %126 = arith.addf %4, %125 : vector<16x64xf32>
    %cst_41 = arith.constant dense<0.000000e+00> : vector<16xf32>
    %127 = vector.multi_reduction <add>, %126, %cst_41 [1] : vector<16x64xf32> to vector<16xf32>
    %128 = vector.shape_cast %127 : vector<16xf32> to vector<16x1xf32>
    %cst_42 = arith.constant 6.400000e+01 : f32
    %129 = vector.broadcast %cst_42 : f32 to vector<16x1xf32>
    %130 = arith.divf %128, %129 : vector<16x1xf32>
    %131 = vector.broadcast %130 : vector<16x1xf32> to vector<16x64xf32>
    %132 = arith.subf %126, %131 : vector<16x64xf32>
    %133 = arith.mulf %132, %132 : vector<16x64xf32>
    %cst_43 = arith.constant dense<0.000000e+00> : vector<16xf32>
    %134 = vector.multi_reduction <add>, %133, %cst_43 [1] : vector<16x64xf32> to vector<16xf32>
    %135 = vector.shape_cast %134 : vector<16xf32> to vector<16x1xf32>
    %cst_44 = arith.constant 6.400000e+01 : f32
    %136 = vector.broadcast %cst_44 : f32 to vector<16x1xf32>
    %137 = arith.divf %135, %136 : vector<16x1xf32>
    %138 = vector.broadcast %130 : vector<16x1xf32> to vector<16x64xf32>
    %139 = arith.subf %126, %138 : vector<16x64xf32>
    %cst_45 = arith.constant 9.99999974E-6 : f32
    %140 = vector.broadcast %cst_45 : f32 to vector<16x1xf32>
    %141 = arith.addf %137, %140 : vector<16x1xf32>
    %142 = math.rsqrt %141 : vector<16x1xf32>
    %143 = vector.broadcast %142 : vector<16x1xf32> to vector<16x64xf32>
    %144 = arith.mulf %139, %143 : vector<16x64xf32>
    %145 = vector.broadcast %13 : vector<1x64xf32> to vector<16x64xf32>
    %146 = arith.mulf %144, %145 : vector<16x64xf32>
    %147 = vector.broadcast %14 : vector<1x64xf32> to vector<16x64xf32>
    %148 = arith.addf %146, %147 : vector<16x64xf32>
    %c0_46 = arith.constant 0 : index
    %c0_47 = arith.constant 0 : index
    %c0_48 = arith.constant 0 : index
    %149 = vector.load %arg6[%c0_46, %c0_47, %c0_48] : memref<2x64x128xf32, #tpu.memory_space<vmem>>, vector<1x64x128xf32>
    %150 = vector.shape_cast %149 : vector<1x64x128xf32> to vector<64x128xf32>
    %cst_49 = arith.constant dense<0.000000e+00> : vector<16x128xf32>
    %151 = tpu.matmul %148, %150, %cst_49 {dimension_numbers = #tpu.dot_dimension_numbers<[1], [0], [0], [1], [0, 0, 1, 1], [], []>} : vector<16x64xf32>, vector<64x128xf32>, vector<16x128xf32> -> vector<16x128xf32>
    %152 = vector.broadcast %16 : vector<1x128xf32> to vector<16x128xf32>
    %153 = arith.addf %151, %152 : vector<16x128xf32>
    %154 = arith.mulf %153, %153 : vector<16x128xf32>
    %155 = arith.mulf %153, %154 : vector<16x128xf32>
    %cst_50 = arith.constant 4.471500e-02 : f32
    %156 = vector.broadcast %cst_50 : f32 to vector<16x128xf32>
    %157 = arith.mulf %156, %155 : vector<16x128xf32>
    %158 = arith.addf %153, %157 : vector<16x128xf32>
    %cst_51 = arith.constant 0.797884583 : f32
    %159 = vector.broadcast %cst_51 : f32 to vector<16x128xf32>
    %160 = arith.mulf %159, %158 : vector<16x128xf32>
    %161 = math.tanh %160 : vector<16x128xf32>
    %cst_52 = arith.constant 1.000000e+00 : f32
    %162 = vector.broadcast %cst_52 : f32 to vector<16x128xf32>
    %163 = arith.addf %162, %161 : vector<16x128xf32>
    %cst_53 = arith.constant 5.000000e-01 : f32
    %164 = vector.broadcast %cst_53 : f32 to vector<16x128xf32>
    %165 = arith.mulf %164, %163 : vector<16x128xf32>
    %166 = arith.mulf %153, %165 : vector<16x128xf32>
    %c0_54 = arith.constant 0 : index
    %c0_55 = arith.constant 0 : index
    %c0_56 = arith.constant 0 : index
    %167 = vector.load %arg7[%c0_54, %c0_55, %c0_56] : memref<2x128x64xf32, #tpu.memory_space<vmem>>, vector<1x128x64xf32>
    %168 = vector.shape_cast %167 : vector<1x128x64xf32> to vector<128x64xf32>
    %cst_57 = arith.constant dense<0.000000e+00> : vector<16x64xf32>
    %169 = tpu.matmul %166, %168, %cst_57 {dimension_numbers = #tpu.dot_dimension_numbers<[1], [0], [0], [1], [0, 0, 1, 1], [], []>} : vector<16x128xf32>, vector<128x64xf32>, vector<16x64xf32> -> vector<16x64xf32>
    %170 = arith.addf %148, %169 : vector<16x64xf32>
    %171 = vector.broadcast %15 : vector<1x64xf32> to vector<16x64xf32>
    %172 = arith.addf %170, %171 : vector<16x64xf32>
    %173 = vector.extract_strided_slice %5 {offsets = [6, 0], sizes = [1, 64], strides = [1, 1]} : vector<15x64xf32> to vector<1x64xf32>
    %174 = vector.extract_strided_slice %5 {offsets = [7, 0], sizes = [1, 64], strides = [1, 1]} : vector<15x64xf32> to vector<1x64xf32>
    %175 = vector.extract_strided_slice %5 {offsets = [8, 0], sizes = [1, 64], strides = [1, 1]} : vector<15x64xf32> to vector<1x64xf32>
    %176 = vector.extract_strided_slice %5 {offsets = [9, 0], sizes = [1, 64], strides = [1, 1]} : vector<15x64xf32> to vector<1x64xf32>
    %177 = vector.extract_strided_slice %5 {offsets = [10, 0], sizes = [1, 64], strides = [1, 1]} : vector<15x64xf32> to vector<1x64xf32>
    %178 = vector.extract_strided_slice %5 {offsets = [11, 0], sizes = [1, 64], strides = [1, 1]} : vector<15x64xf32> to vector<1x64xf32>
    %179 = vector.extract_strided_slice %6 {offsets = [1, 0], sizes = [1, 128], strides = [1, 1]} : vector<2x128xf32> to vector<1x128xf32>
    %cst_58 = arith.constant dense<0.000000e+00> : vector<16xf32>
    %180 = vector.multi_reduction <add>, %172, %cst_58 [1] : vector<16x64xf32> to vector<16xf32>
    %181 = vector.shape_cast %180 : vector<16xf32> to vector<16x1xf32>
    %cst_59 = arith.constant 6.400000e+01 : f32
    %182 = vector.broadcast %cst_59 : f32 to vector<16x1xf32>
    %183 = arith.divf %181, %182 : vector<16x1xf32>
    %184 = vector.broadcast %183 : vector<16x1xf32> to vector<16x64xf32>
    %185 = arith.subf %172, %184 : vector<16x64xf32>
    %186 = arith.mulf %185, %185 : vector<16x64xf32>
    %cst_60 = arith.constant dense<0.000000e+00> : vector<16xf32>
    %187 = vector.multi_reduction <add>, %186, %cst_60 [1] : vector<16x64xf32> to vector<16xf32>
    %188 = vector.shape_cast %187 : vector<16xf32> to vector<16x1xf32>
    %cst_61 = arith.constant 6.400000e+01 : f32
    %189 = vector.broadcast %cst_61 : f32 to vector<16x1xf32>
    %190 = arith.divf %188, %189 : vector<16x1xf32>
    %191 = vector.broadcast %183 : vector<16x1xf32> to vector<16x64xf32>
    %192 = arith.subf %172, %191 : vector<16x64xf32>
    %cst_62 = arith.constant 9.99999974E-6 : f32
    %193 = vector.broadcast %cst_62 : f32 to vector<16x1xf32>
    %194 = arith.addf %190, %193 : vector<16x1xf32>
    %195 = math.rsqrt %194 : vector<16x1xf32>
    %196 = vector.broadcast %195 : vector<16x1xf32> to vector<16x64xf32>
    %197 = arith.mulf %192, %196 : vector<16x64xf32>
    %198 = vector.broadcast %173 : vector<1x64xf32> to vector<16x64xf32>
    %199 = arith.mulf %197, %198 : vector<16x64xf32>
    %200 = vector.broadcast %174 : vector<1x64xf32> to vector<16x64xf32>
    %201 = arith.addf %199, %200 : vector<16x64xf32>
    %c1 = arith.constant 1 : index
    %c0_63 = arith.constant 0 : index
    %c0_64 = arith.constant 0 : index
    %202 = vector.load %arg4[%c1, %c0_63, %c0_64] : memref<2x64x192xf32, #tpu.memory_space<vmem>>, vector<1x64x192xf32>
    %203 = vector.shape_cast %202 : vector<1x64x192xf32> to vector<64x192xf32>
    %cst_65 = arith.constant dense<0.000000e+00> : vector<16x192xf32>
    %204 = tpu.matmul %201, %203, %cst_65 {dimension_numbers = #tpu.dot_dimension_numbers<[1], [0], [0], [1], [0, 0, 1, 1], [], []>} : vector<16x64xf32>, vector<64x192xf32>, vector<16x192xf32> -> vector<16x192xf32>
    %205 = vector.shape_cast %204 : vector<16x192xf32> to vector<2x8x192xf32>
    %206 = vector.extract_strided_slice %205 {offsets = [0, 0, 0], sizes = [2, 8, 16], strides = [1, 1, 1]} : vector<2x8x192xf32> to vector<2x8x16xf32>
    %207 = vector.extract_strided_slice %205 {offsets = [0, 0, 64], sizes = [2, 8, 16], strides = [1, 1, 1]} : vector<2x8x192xf32> to vector<2x8x16xf32>
    %208 = vector.extract_strided_slice %205 {offsets = [0, 0, 128], sizes = [2, 8, 16], strides = [1, 1, 1]} : vector<2x8x192xf32> to vector<2x8x16xf32>
    %cst_66 = arith.constant dense<0.000000e+00> : vector<2x8x8xf32>
    %209 = tpu.matmul %206, %207, %cst_66 {dimension_numbers = #tpu.dot_dimension_numbers<[2], [2], [1], [1], [0, 0, 0, 1, 1, 1], [0], [0]>} : vector<2x8x16xf32>, vector<2x8x16xf32>, vector<2x8x8xf32> -> vector<2x8x8xf32>
    %cst_67 = arith.constant -1.000000e+30 : f32
    %210 = vector.shape_cast %9 : vector<8x8xi1> to vector<1x8x8xi1>
    %211 = vector.broadcast %210 : vector<1x8x8xi1> to vector<2x8x8xi1>
    %212 = vector.broadcast %cst_67 : f32 to vector<2x8x8xf32>
    %213 = arith.select %211, %212, %209 : vector<2x8x8xi1>, vector<2x8x8xf32>
    %cst_68 = arith.constant dense<0xFF800000> : vector<2x8xf32>
    %214 = vector.multi_reduction <maximumf>, %213, %cst_68 [2] : vector<2x8x8xf32> to vector<2x8xf32>
    %215 = vector.shape_cast %214 : vector<2x8xf32> to vector<2x8x1xf32>
    %216 = vector.broadcast %215 : vector<2x8x1xf32> to vector<2x8x8xf32>
    %217 = arith.subf %213, %216 : vector<2x8x8xf32>
    %218 = math.exp %217 : vector<2x8x8xf32>
    %cst_69 = arith.constant dense<0.000000e+00> : vector<2x8xf32>
    %219 = vector.multi_reduction <add>, %218, %cst_69 [2] : vector<2x8x8xf32> to vector<2x8xf32>
    %220 = vector.shape_cast %219 : vector<2x8xf32> to vector<2x8x1xf32>
    %221 = tpu.reciprocal %220 {approx = true} : vector<2x8x1xf32> -> vector<2x8x1xf32>
    %222 = vector.broadcast %221 : vector<2x8x1xf32> to vector<2x8x8xf32>
    %223 = arith.mulf %218, %222 : vector<2x8x8xf32>
    %cst_70 = arith.constant dense<0.000000e+00> : vector<2x8x16xf32>
    %224 = tpu.matmul %223, %208, %cst_70 {dimension_numbers = #tpu.dot_dimension_numbers<[2], [1], [1], [2], [0, 0, 0, 1, 1, 2], [0], [0]>} : vector<2x8x8xf32>, vector<2x8x16xf32>, vector<2x8x16xf32> -> vector<2x8x16xf32>
    %225 = vector.extract_strided_slice %205 {offsets = [0, 0, 16], sizes = [2, 8, 16], strides = [1, 1, 1]} : vector<2x8x192xf32> to vector<2x8x16xf32>
    %226 = vector.extract_strided_slice %205 {offsets = [0, 0, 80], sizes = [2, 8, 16], strides = [1, 1, 1]} : vector<2x8x192xf32> to vector<2x8x16xf32>
    %227 = vector.extract_strided_slice %205 {offsets = [0, 0, 144], sizes = [2, 8, 16], strides = [1, 1, 1]} : vector<2x8x192xf32> to vector<2x8x16xf32>
    %cst_71 = arith.constant dense<0.000000e+00> : vector<2x8x8xf32>
    %228 = tpu.matmul %225, %226, %cst_71 {dimension_numbers = #tpu.dot_dimension_numbers<[2], [2], [1], [1], [0, 0, 0, 1, 1, 1], [0], [0]>} : vector<2x8x16xf32>, vector<2x8x16xf32>, vector<2x8x8xf32> -> vector<2x8x8xf32>
    %cst_72 = arith.constant -1.000000e+30 : f32
    %229 = vector.shape_cast %9 : vector<8x8xi1> to vector<1x8x8xi1>
    %230 = vector.broadcast %229 : vector<1x8x8xi1> to vector<2x8x8xi1>
    %231 = vector.broadcast %cst_72 : f32 to vector<2x8x8xf32>
    %232 = arith.select %230, %231, %228 : vector<2x8x8xi1>, vector<2x8x8xf32>
    %cst_73 = arith.constant dense<0xFF800000> : vector<2x8xf32>
    %233 = vector.multi_reduction <maximumf>, %232, %cst_73 [2] : vector<2x8x8xf32> to vector<2x8xf32>
    %234 = vector.shape_cast %233 : vector<2x8xf32> to vector<2x8x1xf32>
    %235 = vector.broadcast %234 : vector<2x8x1xf32> to vector<2x8x8xf32>
    %236 = arith.subf %232, %235 : vector<2x8x8xf32>
    %237 = math.exp %236 : vector<2x8x8xf32>
    %cst_74 = arith.constant dense<0.000000e+00> : vector<2x8xf32>
    %238 = vector.multi_reduction <add>, %237, %cst_74 [2] : vector<2x8x8xf32> to vector<2x8xf32>
    %239 = vector.shape_cast %238 : vector<2x8xf32> to vector<2x8x1xf32>
    %240 = tpu.reciprocal %239 {approx = true} : vector<2x8x1xf32> -> vector<2x8x1xf32>
    %241 = vector.broadcast %240 : vector<2x8x1xf32> to vector<2x8x8xf32>
    %242 = arith.mulf %237, %241 : vector<2x8x8xf32>
    %cst_75 = arith.constant dense<0.000000e+00> : vector<2x8x16xf32>
    %243 = tpu.matmul %242, %227, %cst_75 {dimension_numbers = #tpu.dot_dimension_numbers<[2], [1], [1], [2], [0, 0, 0, 1, 1, 2], [0], [0]>} : vector<2x8x8xf32>, vector<2x8x16xf32>, vector<2x8x16xf32> -> vector<2x8x16xf32>
    %244 = vector.extract_strided_slice %205 {offsets = [0, 0, 32], sizes = [2, 8, 16], strides = [1, 1, 1]} : vector<2x8x192xf32> to vector<2x8x16xf32>
    %245 = vector.extract_strided_slice %205 {offsets = [0, 0, 96], sizes = [2, 8, 16], strides = [1, 1, 1]} : vector<2x8x192xf32> to vector<2x8x16xf32>
    %246 = vector.extract_strided_slice %205 {offsets = [0, 0, 160], sizes = [2, 8, 16], strides = [1, 1, 1]} : vector<2x8x192xf32> to vector<2x8x16xf32>
    %cst_76 = arith.constant dense<0.000000e+00> : vector<2x8x8xf32>
    %247 = tpu.matmul %244, %245, %cst_76 {dimension_numbers = #tpu.dot_dimension_numbers<[2], [2], [1], [1], [0, 0, 0, 1, 1, 1], [0], [0]>} : vector<2x8x16xf32>, vector<2x8x16xf32>, vector<2x8x8xf32> -> vector<2x8x8xf32>
    %cst_77 = arith.constant -1.000000e+30 : f32
    %248 = vector.shape_cast %9 : vector<8x8xi1> to vector<1x8x8xi1>
    %249 = vector.broadcast %248 : vector<1x8x8xi1> to vector<2x8x8xi1>
    %250 = vector.broadcast %cst_77 : f32 to vector<2x8x8xf32>
    %251 = arith.select %249, %250, %247 : vector<2x8x8xi1>, vector<2x8x8xf32>
    %cst_78 = arith.constant dense<0xFF800000> : vector<2x8xf32>
    %252 = vector.multi_reduction <maximumf>, %251, %cst_78 [2] : vector<2x8x8xf32> to vector<2x8xf32>
    %253 = vector.shape_cast %252 : vector<2x8xf32> to vector<2x8x1xf32>
    %254 = vector.broadcast %253 : vector<2x8x1xf32> to vector<2x8x8xf32>
    %255 = arith.subf %251, %254 : vector<2x8x8xf32>
    %256 = math.exp %255 : vector<2x8x8xf32>
    %cst_79 = arith.constant dense<0.000000e+00> : vector<2x8xf32>
    %257 = vector.multi_reduction <add>, %256, %cst_79 [2] : vector<2x8x8xf32> to vector<2x8xf32>
    %258 = vector.shape_cast %257 : vector<2x8xf32> to vector<2x8x1xf32>
    %259 = tpu.reciprocal %258 {approx = true} : vector<2x8x1xf32> -> vector<2x8x1xf32>
    %260 = vector.broadcast %259 : vector<2x8x1xf32> to vector<2x8x8xf32>
    %261 = arith.mulf %256, %260 : vector<2x8x8xf32>
    %cst_80 = arith.constant dense<0.000000e+00> : vector<2x8x16xf32>
    %262 = tpu.matmul %261, %246, %cst_80 {dimension_numbers = #tpu.dot_dimension_numbers<[2], [1], [1], [2], [0, 0, 0, 1, 1, 2], [0], [0]>} : vector<2x8x8xf32>, vector<2x8x16xf32>, vector<2x8x16xf32> -> vector<2x8x16xf32>
    %263 = vector.extract_strided_slice %205 {offsets = [0, 0, 48], sizes = [2, 8, 16], strides = [1, 1, 1]} : vector<2x8x192xf32> to vector<2x8x16xf32>
    %264 = vector.extract_strided_slice %205 {offsets = [0, 0, 112], sizes = [2, 8, 16], strides = [1, 1, 1]} : vector<2x8x192xf32> to vector<2x8x16xf32>
    %265 = vector.extract_strided_slice %205 {offsets = [0, 0, 176], sizes = [2, 8, 16], strides = [1, 1, 1]} : vector<2x8x192xf32> to vector<2x8x16xf32>
    %cst_81 = arith.constant dense<0.000000e+00> : vector<2x8x8xf32>
    %266 = tpu.matmul %263, %264, %cst_81 {dimension_numbers = #tpu.dot_dimension_numbers<[2], [2], [1], [1], [0, 0, 0, 1, 1, 1], [0], [0]>} : vector<2x8x16xf32>, vector<2x8x16xf32>, vector<2x8x8xf32> -> vector<2x8x8xf32>
    %cst_82 = arith.constant -1.000000e+30 : f32
    %267 = vector.shape_cast %9 : vector<8x8xi1> to vector<1x8x8xi1>
    %268 = vector.broadcast %267 : vector<1x8x8xi1> to vector<2x8x8xi1>
    %269 = vector.broadcast %cst_82 : f32 to vector<2x8x8xf32>
    %270 = arith.select %268, %269, %266 : vector<2x8x8xi1>, vector<2x8x8xf32>
    %cst_83 = arith.constant dense<0xFF800000> : vector<2x8xf32>
    %271 = vector.multi_reduction <maximumf>, %270, %cst_83 [2] : vector<2x8x8xf32> to vector<2x8xf32>
    %272 = vector.shape_cast %271 : vector<2x8xf32> to vector<2x8x1xf32>
    %273 = vector.broadcast %272 : vector<2x8x1xf32> to vector<2x8x8xf32>
    %274 = arith.subf %270, %273 : vector<2x8x8xf32>
    %275 = math.exp %274 : vector<2x8x8xf32>
    %cst_84 = arith.constant dense<0.000000e+00> : vector<2x8xf32>
    %276 = vector.multi_reduction <add>, %275, %cst_84 [2] : vector<2x8x8xf32> to vector<2x8xf32>
    %277 = vector.shape_cast %276 : vector<2x8xf32> to vector<2x8x1xf32>
    %278 = tpu.reciprocal %277 {approx = true} : vector<2x8x1xf32> -> vector<2x8x1xf32>
    %279 = vector.broadcast %278 : vector<2x8x1xf32> to vector<2x8x8xf32>
    %280 = arith.mulf %275, %279 : vector<2x8x8xf32>
    %cst_85 = arith.constant dense<0.000000e+00> : vector<2x8x16xf32>
    %281 = tpu.matmul %280, %265, %cst_85 {dimension_numbers = #tpu.dot_dimension_numbers<[2], [1], [1], [2], [0, 0, 0, 1, 1, 2], [0], [0]>} : vector<2x8x8xf32>, vector<2x8x16xf32>, vector<2x8x16xf32> -> vector<2x8x16xf32>
    %282 = tpu.concatenate %224, %243, %262, %281 in 2 : vector<2x8x16xf32>, vector<2x8x16xf32>, vector<2x8x16xf32>, vector<2x8x16xf32> -> vector<2x8x64xf32>
    %283 = vector.shape_cast %282 : vector<2x8x64xf32> to vector<16x64xf32>
    %c1_86 = arith.constant 1 : index
    %c0_87 = arith.constant 0 : index
    %c0_88 = arith.constant 0 : index
    %284 = vector.load %arg5[%c1_86, %c0_87, %c0_88] : memref<2x64x64xf32, #tpu.memory_space<vmem>>, vector<1x64x64xf32>
    %285 = vector.shape_cast %284 : vector<1x64x64xf32> to vector<64x64xf32>
    %cst_89 = arith.constant dense<0.000000e+00> : vector<16x64xf32>
    %286 = tpu.matmul %283, %285, %cst_89 {dimension_numbers = #tpu.dot_dimension_numbers<[1], [0], [0], [1], [0, 0, 1, 1], [], []>} : vector<16x64xf32>, vector<64x64xf32>, vector<16x64xf32> -> vector<16x64xf32>
    %287 = vector.broadcast %175 : vector<1x64xf32> to vector<16x64xf32>
    %288 = arith.addf %286, %287 : vector<16x64xf32>
    %289 = arith.addf %172, %288 : vector<16x64xf32>
    %cst_90 = arith.constant dense<0.000000e+00> : vector<16xf32>
    %290 = vector.multi_reduction <add>, %289, %cst_90 [1] : vector<16x64xf32> to vector<16xf32>
    %291 = vector.shape_cast %290 : vector<16xf32> to vector<16x1xf32>
    %cst_91 = arith.constant 6.400000e+01 : f32
    %292 = vector.broadcast %cst_91 : f32 to vector<16x1xf32>
    %293 = arith.divf %291, %292 : vector<16x1xf32>
    %294 = vector.broadcast %293 : vector<16x1xf32> to vector<16x64xf32>
    %295 = arith.subf %289, %294 : vector<16x64xf32>
    %296 = arith.mulf %295, %295 : vector<16x64xf32>
    %cst_92 = arith.constant dense<0.000000e+00> : vector<16xf32>
    %297 = vector.multi_reduction <add>, %296, %cst_92 [1] : vector<16x64xf32> to vector<16xf32>
    %298 = vector.shape_cast %297 : vector<16xf32> to vector<16x1xf32>
    %cst_93 = arith.constant 6.400000e+01 : f32
    %299 = vector.broadcast %cst_93 : f32 to vector<16x1xf32>
    %300 = arith.divf %298, %299 : vector<16x1xf32>
    %301 = vector.broadcast %293 : vector<16x1xf32> to vector<16x64xf32>
    %302 = arith.subf %289, %301 : vector<16x64xf32>
    %cst_94 = arith.constant 9.99999974E-6 : f32
    %303 = vector.broadcast %cst_94 : f32 to vector<16x1xf32>
    %304 = arith.addf %300, %303 : vector<16x1xf32>
    %305 = math.rsqrt %304 : vector<16x1xf32>
    %306 = vector.broadcast %305 : vector<16x1xf32> to vector<16x64xf32>
    %307 = arith.mulf %302, %306 : vector<16x64xf32>
    %308 = vector.broadcast %176 : vector<1x64xf32> to vector<16x64xf32>
    %309 = arith.mulf %307, %308 : vector<16x64xf32>
    %310 = vector.broadcast %177 : vector<1x64xf32> to vector<16x64xf32>
    %311 = arith.addf %309, %310 : vector<16x64xf32>
    %c1_95 = arith.constant 1 : index
    %c0_96 = arith.constant 0 : index
    %c0_97 = arith.constant 0 : index
    %312 = vector.load %arg6[%c1_95, %c0_96, %c0_97] : memref<2x64x128xf32, #tpu.memory_space<vmem>>, vector<1x64x128xf32>
    %313 = vector.shape_cast %312 : vector<1x64x128xf32> to vector<64x128xf32>
    %cst_98 = arith.constant dense<0.000000e+00> : vector<16x128xf32>
    %314 = tpu.matmul %311, %313, %cst_98 {dimension_numbers = #tpu.dot_dimension_numbers<[1], [0], [0], [1], [0, 0, 1, 1], [], []>} : vector<16x64xf32>, vector<64x128xf32>, vector<16x128xf32> -> vector<16x128xf32>
    %315 = vector.broadcast %179 : vector<1x128xf32> to vector<16x128xf32>
    %316 = arith.addf %314, %315 : vector<16x128xf32>
    %317 = arith.mulf %316, %316 : vector<16x128xf32>
    %318 = arith.mulf %316, %317 : vector<16x128xf32>
    %cst_99 = arith.constant 4.471500e-02 : f32
    %319 = vector.broadcast %cst_99 : f32 to vector<16x128xf32>
    %320 = arith.mulf %319, %318 : vector<16x128xf32>
    %321 = arith.addf %316, %320 : vector<16x128xf32>
    %cst_100 = arith.constant 0.797884583 : f32
    %322 = vector.broadcast %cst_100 : f32 to vector<16x128xf32>
    %323 = arith.mulf %322, %321 : vector<16x128xf32>
    %324 = math.tanh %323 : vector<16x128xf32>
    %cst_101 = arith.constant 1.000000e+00 : f32
    %325 = vector.broadcast %cst_101 : f32 to vector<16x128xf32>
    %326 = arith.addf %325, %324 : vector<16x128xf32>
    %cst_102 = arith.constant 5.000000e-01 : f32
    %327 = vector.broadcast %cst_102 : f32 to vector<16x128xf32>
    %328 = arith.mulf %327, %326 : vector<16x128xf32>
    %329 = arith.mulf %316, %328 : vector<16x128xf32>
    %c1_103 = arith.constant 1 : index
    %c0_104 = arith.constant 0 : index
    %c0_105 = arith.constant 0 : index
    %330 = vector.load %arg7[%c1_103, %c0_104, %c0_105] : memref<2x128x64xf32, #tpu.memory_space<vmem>>, vector<1x128x64xf32>
    %331 = vector.shape_cast %330 : vector<1x128x64xf32> to vector<128x64xf32>
    %cst_106 = arith.constant dense<0.000000e+00> : vector<16x64xf32>
    %332 = tpu.matmul %329, %331, %cst_106 {dimension_numbers = #tpu.dot_dimension_numbers<[1], [0], [0], [1], [0, 0, 1, 1], [], []>} : vector<16x128xf32>, vector<128x64xf32>, vector<16x64xf32> -> vector<16x64xf32>
    %333 = arith.addf %311, %332 : vector<16x64xf32>
    %334 = vector.broadcast %178 : vector<1x64xf32> to vector<16x64xf32>
    %335 = arith.addf %333, %334 : vector<16x64xf32>
    %336 = vector.extract_strided_slice %5 {offsets = [12, 0], sizes = [1, 64], strides = [1, 1]} : vector<15x64xf32> to vector<1x64xf32>
    %337 = vector.extract_strided_slice %5 {offsets = [13, 0], sizes = [1, 64], strides = [1, 1]} : vector<15x64xf32> to vector<1x64xf32>
    %338 = vector.extract_strided_slice %5 {offsets = [14, 0], sizes = [1, 64], strides = [1, 1]} : vector<15x64xf32> to vector<1x64xf32>
    %cst_107 = arith.constant dense<0.000000e+00> : vector<16xf32>
    %339 = vector.multi_reduction <add>, %335, %cst_107 [1] : vector<16x64xf32> to vector<16xf32>
    %340 = vector.shape_cast %339 : vector<16xf32> to vector<16x1xf32>
    %cst_108 = arith.constant 6.400000e+01 : f32
    %341 = vector.broadcast %cst_108 : f32 to vector<16x1xf32>
    %342 = arith.divf %340, %341 : vector<16x1xf32>
    %343 = vector.broadcast %342 : vector<16x1xf32> to vector<16x64xf32>
    %344 = arith.subf %335, %343 : vector<16x64xf32>
    %345 = arith.mulf %344, %344 : vector<16x64xf32>
    %cst_109 = arith.constant dense<0.000000e+00> : vector<16xf32>
    %346 = vector.multi_reduction <add>, %345, %cst_109 [1] : vector<16x64xf32> to vector<16xf32>
    %347 = vector.shape_cast %346 : vector<16xf32> to vector<16x1xf32>
    %cst_110 = arith.constant 6.400000e+01 : f32
    %348 = vector.broadcast %cst_110 : f32 to vector<16x1xf32>
    %349 = arith.divf %347, %348 : vector<16x1xf32>
    %350 = vector.broadcast %342 : vector<16x1xf32> to vector<16x64xf32>
    %351 = arith.subf %335, %350 : vector<16x64xf32>
    %cst_111 = arith.constant 9.99999974E-6 : f32
    %352 = vector.broadcast %cst_111 : f32 to vector<16x1xf32>
    %353 = arith.addf %349, %352 : vector<16x1xf32>
    %354 = math.rsqrt %353 : vector<16x1xf32>
    %355 = vector.broadcast %354 : vector<16x1xf32> to vector<16x64xf32>
    %356 = arith.mulf %351, %355 : vector<16x64xf32>
    %357 = vector.broadcast %336 : vector<1x64xf32> to vector<16x64xf32>
    %358 = arith.mulf %356, %357 : vector<16x64xf32>
    %359 = vector.broadcast %337 : vector<1x64xf32> to vector<16x64xf32>
    %360 = arith.addf %358, %359 : vector<16x64xf32>
    %361 = vector.shape_cast %360 : vector<16x64xf32> to vector<2x8x64xf32>
    %362 = vector.shape_cast %338 : vector<1x64xf32> to vector<1x1x64xf32>
    %363 = vector.broadcast %362 : vector<1x1x64xf32> to vector<2x8x64xf32>
    %364 = arith.mulf %361, %363 : vector<2x8x64xf32>
    %cst_112 = arith.constant dense<0.000000e+00> : vector<2x8xf32>
    %365 = vector.multi_reduction <add>, %364, %cst_112 [2] : vector<2x8x64xf32> to vector<2x8xf32>
    %366 = vector.shape_cast %365 : vector<2x8xf32> to vector<2x8x1xf32>
    %cst_113 = arith.constant dense<0xFF800000> : vector<2x1xf32>
    %367 = vector.multi_reduction <maximumf>, %366, %cst_113 [1] : vector<2x8x1xf32> to vector<2x1xf32>
    %368 = vector.shape_cast %367 : vector<2x1xf32> to vector<2x1x1xf32>
    %369 = vector.broadcast %368 : vector<2x1x1xf32> to vector<2x8x1xf32>
    %370 = arith.subf %366, %369 : vector<2x8x1xf32>
    %371 = math.exp %370 : vector<2x8x1xf32>
    %cst_114 = arith.constant dense<0.000000e+00> : vector<2x1xf32>
    %372 = vector.multi_reduction <add>, %371, %cst_114 [1] : vector<2x8x1xf32> to vector<2x1xf32>
    %373 = vector.shape_cast %372 : vector<2x1xf32> to vector<2x1x1xf32>
    %374 = tpu.reciprocal %373 {approx = true} : vector<2x1x1xf32> -> vector<2x1x1xf32>
    %375 = vector.broadcast %374 : vector<2x1x1xf32> to vector<2x8x1xf32>
    %376 = arith.mulf %371, %375 : vector<2x8x1xf32>
    %377 = vector.broadcast %376 : vector<2x8x1xf32> to vector<2x8x64xf32>
    %378 = arith.mulf %377, %361 : vector<2x8x64xf32>
    %cst_115 = arith.constant dense<0.000000e+00> : vector<2x64xf32>
    %379 = vector.multi_reduction <add>, %378, %cst_115 [1] : vector<2x8x64xf32> to vector<2x64xf32>
    %c0_116 = arith.constant 0 : index
    %c0_117 = arith.constant 0 : index
    %380 = vector.load %arg8[%c0_116, %c0_117] : memref<64x128xf32, #tpu.memory_space<vmem>>, vector<64x128xf32>
    %cst_118 = arith.constant dense<0.000000e+00> : vector<2x128xf32>
    %381 = tpu.matmul %379, %380, %cst_118 {dimension_numbers = #tpu.dot_dimension_numbers<[1], [0], [0], [1], [0, 0, 1, 1], [], []>} : vector<2x64xf32>, vector<64x128xf32>, vector<2x128xf32> -> vector<2x128xf32>
    %c0_119 = arith.constant 0 : index
    %c0_120 = arith.constant 0 : index
    %382 = vector.load %arg9[%c0_119, %c0_120] : memref<1x128xf32, #tpu.memory_space<vmem>>, vector<1x128xf32>
    %383 = vector.broadcast %382 : vector<1x128xf32> to vector<2x128xf32>
    %384 = arith.addf %381, %383 : vector<2x128xf32>
    %c0_121 = arith.constant 0 : index
    %c0_122 = arith.constant 0 : index
    %385 = vector.load %arg10[%c0_121, %c0_122] : memref<2x128xf32, #tpu.memory_space<vmem>>, vector<2x128xf32>
    tpu.vector_store %arg10[%c0_121, %c0_122], %384 {strides = array<i32>} : memref<2x128xf32, #tpu.memory_space<vmem>>, vector<2x128xf32>,
    return
  }
}

</mosaic_0001>

<bundles_post_ra>
// kernel: tpu_custom_call.1
= control target key start
LH: loop header
LB: loop body
LE: loop exit
PB: predicated region body
PF: predicated region fallthrough
CT: control target
= control target key end

     0   :  { %15 = vsyncpa [#allocation3], 0  ;;  %s5887_s0 = inlined_call_operand.hbm [shape: f32[2,8,64], index: 0, kind: input, shape index: {}]   ;;  %s5888_s1 = inlined_call_operand.vmem [shape: f32[1,8,64], index: 1, kind: input, shape index: {}]   ;;  %s5889_s2 = inlined_call_operand.hbm [shape: f32[15,64], index: 2, kind: input, shape index: {}]   ;;  %s5890_s3 = inlined_call_operand.vmem [shape: f32[2,128], index: 3, kind: input, shape index: {}]   ;;  %s5891_s4 = inlined_call_operand.vmem [shape: f32[2,64,192], index: 4, kind: input, shape index: {}]   ;;  %s5892_s5 = inlined_call_operand.vmem [shape: f32[2,64,64], index: 5, kind: input, shape index: {}]   ;;  %s5893_s6 = inlined_call_operand.hbm [shape: f32[2,64,128], index: 6, kind: input, shape index: {}]   ;;  %s5894_s7 = inlined_call_operand.vmem [shape: f32[2,128,64], index: 7, kind: input, shape index: {}]   ;;  %s5895_s8 = inlined_call_operand.hbm [shape: f32[64,128], index: 8, kind: input, shape index: {}]   ;;  %s5896_s9 = inlined_call_operand.vmem [shape: f32[1,128], index: 9, kind: input, shape index: {}]   ;;  %s5897_s10 = inlined_call_operand.hbm [shape: f32[2,128], index: 10, kind: output, shape index: {}]  }
   0x1   :  { %16 = vsyncpa [#allocation6], 0 }
   0x2   :  { %17 = vsyncpa [#allocation9], 0 }
   0x3   :  { %18 = vsyncpa [#allocation4], 0  ;;  %s4973_s13 = smov [#allocation5]   ;;  %s4974_s15 = smov [#allocation2]  }
   0x4   :  { %s38_s14 = sshll.u32 %s4973_s13, 4  ;;  %s24_s16 = sshll.u32 %s4974_s15, 4  ;;  %s39_s14 = int_to_ptr.vmem [resolvable:$true] %s38_s14  ;;  %s5045_s16 = int_to_ptr.vmem [resolvable:$true] %s24_s16 }
   0x5   :  { %s4855_s19 = scalar_lea.hbm %s5889_s2, 256 }
   0x6   :  { %p4856_p0 = scmp.ne.s32.totalorder %s5889_s2, %s4855_s19  ;;  %p4859_p1 = scmp.lt.u32.totalorder %s4855_s19, %s5889_s2 }
   0x8   :  { %p4861_p2 = pnand %p4859_p1, %p4856_p0 }
   0xa   :  { %4864 = shalt.err (!%p4861_p2)
}
   0xb   :  { %s4865_s24 = scalar_lea.vmem %s39_s14, 256  ;;  %p4870_p4 = scmp.lt.s32.totalorder %s39_s14, %s39_s14 }
   0xc   :  { %p4866_p3 = scmp.ne.s32.totalorder %s39_s14, %s4865_s24  ;;  %p4871_p5 = scmp.lt.s32.totalorder %s4865_s24, %s4865_s24 }
   0xe   :  { %p4872_p6 = por %p4871_p5, %p4870_p4 }
  0x10   :  { %p4873_p7 = pnand %p4872_p6, %p4866_p3 }
  0x12   :  { %4876 = shalt.err (!%p4873_p7)
}
  0x13   :  { %s4975_s25 = smov 128   ;;  %s4976_s26 = smov 8  }
  0x14   :  { %44 = dma.hbm_to_vmem [thread:$0]  %s5889_s2, 256, %s39_s14, [#allocation6], %s4975_s25, %s4975_s25, %s4976_s26  }
  0x15   :  { %s4877_s11 = scalar_lea.hbm %s5887_s0, 256 }
  0x16   :  { %p4878_p8 = scmp.ne.s32.totalorder %s5887_s0, %s4877_s11  ;;  %p4881_p9 = scmp.lt.u32.totalorder %s4877_s11, %s5887_s0 }
  0x18   :  { %p4883_p10 = pnand %p4881_p9, %p4878_p8 }
  0x1a   :  { %4886 = shalt.err (!%p4883_p10)
}
  0x1b   :  { %s4887_s18 = scalar_lea.vmem %s5045_s16, 256  ;;  %p4892_p12 = scmp.lt.s32.totalorder %s5045_s16, %s5045_s16 }
  0x1c   :  { %p4888_p11 = scmp.ne.s32.totalorder %s5045_s16, %s4887_s18  ;;  %p4893_p13 = scmp.lt.s32.totalorder %s4887_s18, %s4887_s18 }
  0x1e   :  { %p4894_p0 = por %p4893_p13, %p4892_p12 }
  0x20   :  { %p4895_p1 = pnand %p4894_p0, %p4888_p11 }
  0x22   :  { %4898 = shalt.err (!%p4895_p1)
}
  0x23   :  { %30 = dma.hbm_to_vmem [thread:$0]  %s5887_s0, 256, %s5045_s16, [#allocation3], %s4975_s25, %s4975_s25, %s4976_s26  }
  0x24   :  { %s4977_s19 = smov [#allocation7]   ;;  %s4978_s21 = smov [#allocation8]  }
  0x25   :  { %s56_s20 = sshll.u32 %s4977_s19, 4  ;;  %s70_s22 = sshll.u32 %s4978_s21, 4  ;;  %s57_s20 = int_to_ptr.vmem [resolvable:$true] %s56_s20  ;;  %s5082_s22 = int_to_ptr.vmem [resolvable:$true] %s70_s22 }
  0x26   :  { %s4899_s27 = scalar_lea.hbm %s5893_s6, 2048 }
  0x27   :  { %p4900_p2 = scmp.ne.s32.totalorder %s5893_s6, %s4899_s27  ;;  %p4903_p3 = scmp.lt.u32.totalorder %s4899_s27, %s5893_s6 }
  0x29   :  { %p4905_p4 = pnand %p4903_p3, %p4900_p2 }
  0x2b   :  { %4908 = shalt.err (!%p4905_p4)
}
  0x2c   :  { %s4909_s0 = scalar_lea.vmem %s57_s20, 2048  ;;  %p4914_p6 = scmp.lt.s32.totalorder %s57_s20, %s57_s20 }
  0x2d   :  { %p4910_p5 = scmp.ne.s32.totalorder %s57_s20, %s4909_s0  ;;  %p4915_p7 = scmp.lt.s32.totalorder %s4909_s0, %s4909_s0 }
  0x2f   :  { %p4916_p8 = por %p4915_p7, %p4914_p6 }
  0x31   :  { %p4917_p9 = pnand %p4916_p8, %p4910_p5 }
  0x33   :  { %4920 = shalt.err (!%p4917_p9)
}
  0x34   :  { %62 = dma.hbm_to_vmem [thread:$0]  %s5893_s6, 2048, %s57_s20, [#allocation6], %s4975_s25, %s4975_s25, %s4976_s26  }
  0x35   :  { %s4921_s17 = scalar_lea.hbm %s5895_s8, 1024 }
  0x36   :  { %p4922_p10 = scmp.ne.s32.totalorder %s5895_s8, %s4921_s17  ;;  %p4925_p11 = scmp.lt.u32.totalorder %s4921_s17, %s5895_s8 }
  0x38   :  { %p4927_p12 = pnand %p4925_p11, %p4922_p10 }
  0x3a   :  { %4930 = shalt.err (!%p4927_p12)
}
  0x3b   :  { %s4931_s21 = scalar_lea.vmem %s5082_s22, 1024  ;;  %p4936_p0 = scmp.lt.s32.totalorder %s5082_s22, %s5082_s22 }
  0x3c   :  { %p4932_p13 = scmp.ne.s32.totalorder %s5082_s22, %s4931_s21  ;;  %p4937_p1 = scmp.lt.s32.totalorder %s4931_s21, %s4931_s21 }
  0x3e   :  { %p4938_p2 = por %p4937_p1, %p4936_p0 }
  0x40   :  { %p4939_p3 = pnand %p4938_p2, %p4932_p13 }
  0x42   :  { %4942 = shalt.err (!%p4939_p3)
}
  0x43   :  { %76 = dma.hbm_to_vmem [thread:$0]  %s5895_s8, 1024, %s5082_s22, [#allocation9], %s4975_s25, %s4975_s25, %s4976_s26  }
  0x44   :  { %4965 = dma.done.wait [#allocation3], 256  }
  0x45   :  { %4966 = vsyncadd [#allocation3], 4294967040 }
  0x46   :  { %4967 = dma.done.wait [#allocation6], 2304  }
  0x47   :  { %4968 = vsyncadd [#allocation6], 4294964992 }
  0x48   :  { %4969 = dma.done.wait [#allocation9], 1024  }
  0x49   :  { %4970 = vsyncadd [#allocation9], 4294966272  ;;  %v91_v0 = vld [vmem:[#allocation2] sm:$0xff]  ;;  %vm104_vm0 = vcmask 523264   ;;  %v92_v2 = vld [vmem:[#allocation2 + $0x8] sm:$0xff]  ;;  %v4979_v36 = vmov 0.0   ;;  %v99_v44 = vlaneseq }
  0x4a   :  { %v93_v1 = vld [vmem:[%s5888_s1] sm:$0xff]  ;;  %v145_v17 = vld [vmem:[%s5891_s4 + $0x8] sm:$0xff]  ;;  %v147_v18 = vld [vmem:[%s5891_s4 + $0x18] sm:$0xff]  ;;  %230 = vmatprep.mubr.f32.mxu0 %v4979_v36  ;;  %4240 = vmatprep.subr.mxu1 %v4979_v36  ;;  %vm4980_vm1 = vmmov 0   ;;  %s4981_s29 = smov 64   ;;  %vm246_vm2 = vcmask 130048  }
  0x4b   :  { %v5122_v3 = vadd.f32 %v93_v1, %v91_v0  ;;  %v5124_v4 = vadd.f32 %v93_v1, %v92_v2  ;;  %v4565_v19 = vpack.c.bf16 %v147_v18, %v145_v17  ;;  %v144_v20 = vld [vmem:[%s5891_s4] sm:$0xff]  ;;  %v146_v21 = vld [vmem:[%s5891_s4 + $0x10] sm:$0xff]  ;;  %v149_v23 = vld [vmem:[%s5891_s4 + $0x28] sm:$0xff]  ;;  %v5185_v48 = vshrl.u32 %v99_v44, 7  ;;  %4242 = vmatprep.mubr.msk.f32.mxu1 %vm4980_vm1, %v4979_v36  ;;  %s4982_s30 = smov 112   ;;  %s4983_s11 = smov 48  }
  0x4c   :  { %v4567_v22 = vpack.c.bf16 %v146_v21, %v144_v20  ;;  %v151_v24 = vld [vmem:[%s5891_s4 + $0x38] sm:$0xff]  ;;  %v148_v26 = vld [vmem:[%s5891_s4 + $0x20] sm:$0xff]  ;;  %v150_v27 = vld [vmem:[%s5891_s4 + $0x30] sm:$0xff]  ;;  %vm402_vm4 = vcmask 64512   ;;  %s4984_s0 = smov 32   ;;  %s4985_s16 = smov 96  }
  0x4d   :  { %v105_v5 = vsel %vm104_vm0, %v5122_v3, 0.0  ;;  %v108_v6 = vsel %vm104_vm0, %v5124_v4, 0.0  ;;  %4566 = vmatprep.subr.bf16.mxu0 %v4565_v19  ;;  %v4569_v25 = vpack.c.bf16 %v151_v24, %v149_v23  ;;  %v4571_v28 = vpack.c.bf16 %v150_v27, %v148_v26  ;;  %v153_v29 = vld [vmem:[%s5891_s4 + $0x48] sm:$0xff]  ;;  %v155_v30 = vld [vmem:[%s5891_s4 + $0x58] sm:$0xff]  ;;  %v152_v31 = vld [vmem:[%s5891_s4 + $0x40] sm:$0xff]  ;;  %s4986_s12 = smov 16  }
  0x4e   :  { %106 = vadd.xlane.f32.xlu0 %v105_v5  ;;  %4568 = vmatpush1.bf16.msra.mxu0 %v4567_v22  ;;  %v4573_v32 = vpack.c.bf16 %v155_v30, %v153_v29  ;;  %v154_v33 = vld [vmem:[%s5891_s4 + $0x50] sm:$0xff]  ;;  %v157_v34 = vld [vmem:[%s5891_s4 + $0x68] sm:$0xff]  ;;  %v159_v35 = vld [vmem:[%s5891_s4 + $0x78] sm:$0xff]  ;;  %v5188_v50 = vsub.s32 0, %v5185_v48  ;;  %v5193_v52 = vsub.s32 1, %v5185_v48  ;;  %s4987_s13 = smov 80  }
  0x4f   :  { %4570 = vmatprep.subr.bf16.mxu0 %v4569_v25  ;;  %v4575_v37 = vpack.c.bf16 %v154_v33, %v152_v31  ;;  %v4577_v38 = vpack.c.bf16 %v159_v35, %v157_v34  ;;  %v156_v39 = vld [vmem:[%s5891_s4 + $0x60] sm:$0xff]  ;;  %v158_v40 = vld [vmem:[%s5891_s4 + $0x70] sm:$0xff]  ;;  %vm1595_vm5 = vcmask 261120   ;;  %vm1598_vm6 = vcmask 392192   ;;  %s4989_s17 = smov [#allocation10]  }
  0x50   :  { %v4579_v41 = vpack.c.bf16 %v158_v40, %v156_v39  ;;  %v5190_v51 = vld [vmem:[#allocation5] sm:$0xff]  ;;  %vm3897_vm7 = vcmask 1041409   ;;  %s3978_s18 = sshll.u32 %s4989_s17, 4  ;;  %s3979_s18 = int_to_ptr.vmem [resolvable:$true] %s3978_s18 }
  0x51   :  { %v135_v53 = vrot.slane %v5190_v51, %v5188_v50  ;;  %v141_v56 = vrot.slane %v5190_v51, %v5193_v52  ;;  %s4943_s2 = scalar_lea.vmem %s3979_s18, 32  ;;  %p4948_p5 = scmp.lt.s32.totalorder %s3979_s18, %s3979_s18 }
  0x52   :  { %109 = vadd.xlane.f32.xlu0 %v108_v6  ;;  %4572 = vmatpush1.bf16.msra.mxu0 %v4571_v28  ;;  %p4944_p4 = scmp.ne.s32.totalorder %s3979_s18, %s4943_s2  ;;  %p4949_p6 = scmp.lt.s32.totalorder %s4943_s2, %s4943_s2 }
  0x53   :  { %4574 = vmatprep.subr.bf16.mxu0 %v4573_v32 }
  0x54   :  { %p4950_p7 = por %p4949_p6, %p4948_p5 }
  0x56   :  { %4576 = vmatpush1.bf16.msra.mxu0 %v4575_v37  ;;  %p4951_p8 = pnand %p4950_p7, %p4944_p4 }
  0x57   :  { %4578 = vmatprep.subr.bf16.mxu0 %v4577_v38 }
  0x5a   :  { %4580 = vmatpush1.bf16.msra.mxu0 %v4579_v41 }
  0x5b   :  { %4285 = vmatprep.subr.mxu0 %v4979_v36 }
  0xdb   :  { %v107_v7 = vpop.xlane.xlu0 %106 }
  0xdc   :  { %v112_v8 = vmul.f32 0.015625, %v107_v7  ;;  %v102_v7 = vand.u32 127, %v99_v44 }
  0xde   :  { %v114_v9 = vsub.f32 %v5122_v3, %v112_v8  ;;  %vm5233_vm3 = vcmp.eq.s32.totalorder %v5185_v48, %v102_v7 }
  0xdf   :  { %v110_v10 = vpop.xlane.xlu0 %109 }
  0xe0   :  { %v113_v11 = vmul.f32 0.015625, %v110_v10  ;;  %v116_v12 = vmul.f32 %v114_v9, %v114_v9 }
  0xe2   :  { %v115_v13 = vsub.f32 %v5124_v4, %v113_v11  ;;  %v118_v14 = vsel %vm104_vm0, %v116_v12, 0.0 }
  0xe3   :  { %119 = vadd.xlane.f32.xlu1 %v118_v14 }
  0xe4   :  { %v117_v15 = vmul.f32 %v115_v13, %v115_v13 }
  0xe6   :  { %v121_v16 = vsel %vm104_vm0, %v117_v15, 0.0 }
  0xe7   :  { %122 = vadd.xlane.f32.xlu1 %v121_v16 }
 0x170   :  { %v120_v42 = vpop.xlane.xlu1 %119 }
 0x171   :  { %v124_v43 = vmul.f32 0.015625, %v120_v42 }
 0x173   :  { %v126_v45 = vadd.f32 1e-05, %v124_v43 }
 0x174   :  { %v123_v46 = vpop.xlane.xlu1 %122 }
 0x175   :  { %4754 = vrsqrt.f32 %v126_v45  ;;  %v125_v47 = vmul.f32 0.015625, %v123_v46 }
 0x177   :  { %v127_v49 = vadd.f32 1e-05, %v125_v47 }
 0x179   :  { %4756 = vrsqrt.f32 %v127_v49 }
 0x17f   :  { %v4755_v54 = vpop.eup %4754 }
 0x180   :  { %v130_v55 = vmul.f32 %v4755_v54, %v114_v9 }
 0x182   :  { %v136_v57 = vmul.f32 %v135_v53, %v130_v55 }
 0x183   :  { %v4757_v58 = vpop.eup %4756 }
 0x184   :  { %v142_v59 = vadd.f32 %v141_v56, %v136_v57  ;;  %v131_v60 = vmul.f32 %v4757_v58, %v115_v13 }
 0x186   :  { %3989 = vmatmul.mubr.msk.f32.vlgmr.msra.gmra.mrb[0].mxu0 %vm104_vm0, %v142_v59  ;;  %v137_v61 = vmul.f32 %v135_v53, %v131_v60 }
 0x187   :  { %236 = vmatprep.mubr.f32.mxu0 %v4979_v36 }
 0x188   :  { %v143_v62 = vadd.f32 %v141_v56, %v137_v61 }
 0x18a   :  { %3990 = vmatmul.mubr.msk.f32.gmra.mrb[2].mxu0 %vm104_vm0, %v143_v62 }
 0x18b   :  { %4287 = vmatprep.mubr.msk.f32.mxu0 %vm4980_vm1, %v4979_v36 }
 0x259   :  { %v5206_v63 = vpop.f32.mrb[0].mxu0 }
 0x25a   :  { %244 = vrot.lane.b32.xlu0 %v5206_v63, %s4981_s29  ;;  %v5210_v0 = vpop.f32.mrb[1].mxu0 }
 0x25d   :  { %v5212_v1 = vpop.f32.mrb[2].mxu0 }
 0x25e   :  { %322 = vrot.lane.b32.xlu1 %v5212_v1, %s4981_s29  ;;  %v5216_v2 = vpop.f32.mrb[3].mxu0 }
 0x2cc   :  { %v245_v5 = vpop.permute.xlu0 %244 }
 0x2cd   :  { %4241 = vmatpush3.xpose.msk.msra.mxu1 %vm246_vm2, %v245_v5 }
 0x2ce   :  { %4245 = vmatprep.subr.mxu1 %v4979_v36 }
 0x2d0   :  { %v323_v6 = vpop.permute.xlu1 %322  ;;  %4243 = vmatmul.mubr.msk.f32.vlgmr.msra.gmra.mrb[0].mxu1 %vm246_vm2, %v5206_v63 }
 0x2d1   :  { %4246 = vmatpush3.xpose.msk.msra.mxu1 %vm246_vm2, %v323_v6  ;;  %4247 = vmatprep.mubr.msk.f32.mxu1 %vm4980_vm1, %v4979_v36 }
 0x2d2   :  { %4250 = vmatprep.subr.mxu1 %v4979_v36 }
 0x2d4   :  { %4248 = vmatmul.mubr.msk.f32.vlgmr.msra.gmra.mrb[2].mxu1 %vm246_vm2, %v5212_v1 }
 0x2d5   :  { %4251 = vmatpush3.msra.mxu1 %v5210_v0  ;;  %4252 = vmatprep.mubr.msk.f32.mxu1 %vm4980_vm1, %v4979_v36 }
 0x2d6   :  { %4255 = vmatprep.subr.mxu1 %v4979_v36 }
 0x3a3   :  { %v317_v9 = vpop.f32.mrb[0].mxu1 }
 0x3a4   :  { %v400_v10 = vsel %vm5233_vm3, -1e+30, %v317_v9  ;;  %v4244_v11 = vpop.f32.mrb[1].mxu1 }
 0x3a5   :  { %v403_v12 = vsel %vm402_vm4, %v400_v10, -inf }
 0x3a6   :  { %404 = vmax.xlane.f32.xlu1 %v403_v12 }
 0x3a7   :  { %v394_v13 = vpop.f32.mrb[2].mxu1 }
 0x3a8   :  { %v401_v14 = vsel %vm5233_vm3, -1e+30, %v394_v13  ;;  %v4249_v15 = vpop.f32.mrb[3].mxu1 }
 0x3a9   :  { %v406_v16 = vsel %vm402_vm4, %v401_v14, -inf }
 0x3aa   :  { %407 = vmax.xlane.f32.xlu0 %v406_v16 }
 0x3b7   :  { %571 = vrot.lane.b32.xlu1 %v5206_v63, %s4982_s30 }
 0x433   :  { %v405_v17 = vpop.xlane.xlu1 %404 }
 0x434   :  { %v409_v18 = vsub.f32 %v400_v10, %v405_v17 }
 0x436   :  { %v411_v19 = vmul.f32 1.442695, %v409_v18 }
 0x437   :  { %v408_v20 = vpop.xlane.xlu0 %407  ;;  %v572_v27 = vpop.permute.xlu1 %571 }
 0x438   :  { %4758 = vpow2.f32 %v411_v19  ;;  %v410_v21 = vsub.f32 %v401_v14, %v408_v20 }
 0x43a   :  { %v413_v22 = vmul.f32 1.442695, %v410_v21 }
 0x43c   :  { %4760 = vpow2.f32 %v413_v22 }
 0x442   :  { %v4759_v23 = vpop.eup %4758 }
 0x443   :  { %v415_v24 = vsel %vm402_vm4, %v4759_v23, 0.0 }
 0x444   :  { %416 = vadd.xlane.f32.xlu0 %v415_v24 }
 0x446   :  { %v4761_v25 = vpop.eup %4760 }
 0x447   :  { %v418_v26 = vsel %vm402_vm4, %v4761_v25, 0.0 }
 0x448   :  { %419 = vadd.xlane.f32.xlu1 %v418_v26 }
 0x459   :  { %651 = vrot.lane.b32.xlu1 %v5212_v1, %s4983_s11 }
 0x45a   :  { %573 = vrot.lane.b32.xlu0 %v5206_v63, %s4983_s11 }
 0x45d   :  { %649 = vrot.lane.b32.xlu1 %v5212_v1, %s4982_s30 }
 0x4d1   :  { %v417_v28 = vpop.xlane.xlu0 %416 }
 0x4d2   :  { %4762 = vrcp.f32 %v417_v28 }
 0x4d5   :  { %v420_v29 = vpop.xlane.xlu1 %419  ;;  %v574_v34 = vpop.permute.xlu0 %573 }
 0x4d6   :  { %4764 = vrcp.f32 %v420_v29 }
 0x4d9   :  { %v652_v35 = vpop.permute.xlu1 %651 }
 0x4dc   :  { %v4763_v30 = vpop.eup %4762 }
 0x4dd   :  { %v423_v31 = vmul.f32 %v4763_v30, %v4759_v23  ;;  %v650_v37 = vpop.permute.xlu1 %649 }
 0x4df   :  { %4253 = vmatmul.mubr.msk.f32.vlgmr.msra.gmra.mrb[4].mxu1 %vm402_vm4, %v423_v31 }
 0x4e0   :  { %v4765_v32 = vpop.eup %4764  ;;  %4256 = vmatpush3.msra.mxu1 %v5216_v2  ;;  %4257 = vmatprep.mubr.msk.f32.mxu1 %vm4980_vm1, %v4979_v36 }
 0x4e1   :  { %v424_v33 = vmul.f32 %v4765_v32, %v4761_v25  ;;  %4260 = vmatprep.subr.mxu1 %v4979_v36 }
 0x4e3   :  { %4258 = vmatmul.mubr.msk.f32.vlgmr.msra.gmra.mrb[6].mxu1 %vm402_vm4, %v424_v33 }
 0x4e4   :  { %4262 = vmatprep.mubr.msk.f32.mxu1 %vm4980_vm1, %v4979_v36 }
 0x4e7   :  { %4261 = vmatpush3.xpose.msk.msra.mxu1 %vm246_vm2, %v574_v34 }
 0x4e8   :  { %4265 = vmatprep.subr.mxu1 %v4979_v36 }
 0x4ea   :  { %4263 = vmatmul.mubr.msk.f32.vlgmr.msra.gmra.mrb[8].mxu1 %vm246_vm2, %v572_v27 }
 0x4eb   :  { %4266 = vmatpush3.xpose.msk.msra.mxu1 %vm246_vm2, %v652_v35  ;;  %4267 = vmatprep.mubr.msk.f32.mxu1 %vm4980_vm1, %v4979_v36 }
 0x4ec   :  { %4270 = vmatprep.subr.mxu1 %v4979_v36 }
 0x4ee   :  { %4268 = vmatmul.mubr.msk.f32.vlgmr.msra.gmra.mrb[10].mxu1 %vm246_vm2, %v650_v37 }
 0x4ef   :  { %4272 = vmatprep.mubr.msk.f32.mxu1 %vm4980_vm1, %v4979_v36 }
 0x5b2   :  { %v5271_v38 = vpop.f32.mrb[4].mxu1 }
 0x5b3   :  { %v4254_v39 = vpop.f32.mrb[5].mxu1 }
 0x5b6   :  { %v5273_v40 = vpop.f32.mrb[6].mxu1 }
 0x5b7   :  { %v4259_v41 = vpop.f32.mrb[7].mxu1 }
 0x5bd   :  { %v645_v42 = vpop.f32.mrb[8].mxu1 }
 0x5be   :  { %v727_v43 = vsel %vm5233_vm3, -1e+30, %v645_v42  ;;  %v4264_v44 = vpop.f32.mrb[9].mxu1 }
 0x5bf   :  { %v729_v45 = vsel %vm402_vm4, %v727_v43, -inf }
 0x5c0   :  { %730 = vmax.xlane.f32.xlu0 %v729_v45 }
 0x5c1   :  { %v723_v46 = vpop.f32.mrb[10].mxu1 }
 0x5c2   :  { %v728_v47 = vsel %vm5233_vm3, -1e+30, %v723_v46  ;;  %v4269_v49 = vpop.f32.mrb[11].mxu1 }
 0x5c3   :  { %v732_v53 = vsel %vm402_vm4, %v728_v47, -inf }
 0x5c4   :  { %733 = vmax.xlane.f32.xlu1 %v732_v53 }
 0x5d5   :  { %829 = vrot.lane.b32.xlu1 %v5216_v2, %s4982_s30 }
 0x5d9   :  { %907 = vrot.lane.b32.xlu1 %v5206_v63, %s4984_s0 }
 0x5dd   :  { %985 = vrot.lane.b32.xlu1 %v5212_v1, %s4984_s0 }
 0x5e1   :  { %983 = vrot.lane.b32.xlu1 %v5212_v1, %s4985_s16 }
 0x64d   :  { %v731_v54 = vpop.xlane.xlu0 %730 }
 0x64e   :  { %v735_v55 = vsub.f32 %v727_v43, %v731_v54 }
 0x650   :  { %v737_v56 = vmul.f32 1.442695, %v735_v55 }
 0x651   :  { %v734_v57 = vpop.xlane.xlu1 %733 }
 0x652   :  { %4766 = vpow2.f32 %v737_v56  ;;  %v736_v6 = vsub.f32 %v728_v47, %v734_v57 }
 0x654   :  { %v739_v7 = vmul.f32 1.442695, %v736_v6 }
 0x655   :  { %v830_v58 = vpop.permute.xlu1 %829 }
 0x656   :  { %4768 = vpow2.f32 %v739_v7 }
 0x659   :  { %v908_v59 = vpop.permute.xlu1 %907 }
 0x65c   :  { %v4767_v60 = vpop.eup %4766 }
 0x65d   :  { %v986_v61 = vpop.permute.xlu1 %985  ;;  %v741_v62 = vsel %vm402_vm4, %v4767_v60, 0.0 }
 0x65e   :  { %742 = vadd.xlane.f32.xlu0 %v741_v62  ;;  %4286 = vmatpush3.xpose.msk.msra.mxu0 %vm246_vm2, %v986_v61 }
 0x65f   :  { %4295 = vmatprep.subr.mxu0 %v4979_v36 }
 0x660   :  { %v4769_v9 = vpop.eup %4768 }
 0x661   :  { %v984_v5 = vpop.permute.xlu1 %983  ;;  %v744_v10 = vsel %vm402_vm4, %v4769_v9, 0.0 }
 0x662   :  { %4288 = vmatmul.mubr.msk.f32.vlgmr.msra.gmra.mrb[4].mxu0 %vm246_vm2, %v984_v5 }
 0x663   :  { %4297 = vmatprep.mubr.msk.f32.mxu0 %vm4980_vm1, %v4979_v36 }
 0x674   :  { %752 = vrot.lane.b32.xlu0 %v5210_v0, %s4982_s30 }
 0x693   :  { %745 = vadd.xlane.f32.xlu0 %v744_v10 }
 0x6a9   :  { %905 = vrot.lane.b32.xlu0 %v5206_v63, %s4985_s16 }
 0x6eb   :  { %v743_v11 = vpop.xlane.xlu0 %742 }
 0x6ec   :  { %4770 = vrcp.f32 %v743_v11 }
 0x6ef   :  { %v753_v12 = vpop.permute.xlu0 %752 }
 0x6f0   :  { %4271 = vmatpush3.msra.mxu1 %v753_v12 }
 0x6f1   :  { %4275 = vmatprep.subr.mxu1 %v4979_v36 }
 0x6f6   :  { %v4771_v13 = vpop.eup %4770 }
 0x6f7   :  { %v749_v14 = vmul.f32 %v4771_v13, %v4767_v60 }
 0x6f9   :  { %4273 = vmatmul.mubr.msk.f32.vlgmr.msra.gmra.mrb[12].mxu1 %vm402_vm4, %v749_v14 }
 0x6fa   :  { %4276 = vmatpush3.msra.mxu1 %v830_v58  ;;  %4277 = vmatprep.mubr.msk.f32.mxu1 %vm4980_vm1, %v4979_v36 }
 0x6fb   :  { %4280 = vmatprep.subr.mxu1 %v4979_v36 }
 0x720   :  { %v746_v15 = vpop.xlane.xlu0 %745 }
 0x721   :  { %4772 = vrcp.f32 %v746_v15 }
 0x724   :  { %v906_v18 = vpop.permute.xlu0 %905 }
 0x72b   :  { %v4773_v16 = vpop.eup %4772 }
 0x72c   :  { %v750_v17 = vmul.f32 %v4773_v16, %v4769_v9 }
 0x72e   :  { %4278 = vmatmul.mubr.msk.f32.vlgmr.msra.gmra.mrb[14].mxu1 %vm402_vm4, %v750_v17 }
 0x72f   :  { %4281 = vmatpush3.xpose.msk.msra.mxu1 %vm246_vm2, %v908_v59  ;;  %4282 = vmatprep.mubr.msk.f32.mxu1 %vm4980_vm1, %v4979_v36 }
 0x730   :  { %4290 = vmatprep.subr.mxu1 %v4979_v36 }
 0x732   :  { %4283 = vmatmul.mubr.msk.f32.vlgmr.msra.gmra.mrb[16].mxu1 %vm246_vm2, %v906_v18 }
 0x733   :  { %4292 = vmatprep.mubr.msk.f32.mxu1 %vm4980_vm1, %v4979_v36 }
 0x735   :  { %v1057_v19 = vpop.f32.mrb[4].mxu0 }
 0x736   :  { %v1062_v20 = vsel %vm5233_vm3, -1e+30, %v1057_v19  ;;  %v4289_v21 = vpop.f32.mrb[5].mxu0 }
 0x737   :  { %v1066_v22 = vsel %vm402_vm4, %v1062_v20, -inf }
 0x738   :  { %1067 = vmax.xlane.f32.xlu1 %v1066_v22 }
 0x749   :  { %1161 = vrot.lane.b32.xlu1 %v5216_v2, %s4985_s16 }
 0x74d   :  { %1239 = vrot.lane.b32.xlu1 %v5206_v63, %s4986_s12 }
 0x751   :  { %1317 = vrot.lane.b32.xlu1 %v5212_v1, %s4986_s12 }
 0x755   :  { %1315 = vrot.lane.b32.xlu1 %v5212_v1, %s4987_s13 }
 0x7c5   :  { %v1068_v23 = vpop.xlane.xlu1 %1067 }
 0x7c6   :  { %v1070_v27 = vsub.f32 %v1062_v20, %v1068_v23 }
 0x7c8   :  { %v1073_v28 = vmul.f32 1.442695, %v1070_v27 }
 0x7c9   :  { %v1162_v24 = vpop.permute.xlu1 %1161 }
 0x7ca   :  { %4296 = vmatpush3.msra.mxu0 %v1162_v24  ;;  %4774 = vpow2.f32 %v1073_v28 }
 0x7cb   :  { %4305 = vmatprep.subr.mxu0 %v4979_v36 }
 0x7cc   :  { %v824_v25 = vpop.f32.mrb[12].mxu1 }
 0x7cd   :  { %v4274_v26 = vpop.f32.mrb[13].mxu1  ;;  %v1240_v44 = vpop.permute.xlu1 %1239 }
 0x7d1   :  { %v1318_v47 = vpop.permute.xlu1 %1317 }
 0x7d4   :  { %v4775_v1 = vpop.eup %4774 }
 0x7d5   :  { %v1078_v35 = vsel %vm402_vm4, %v4775_v1, 0.0  ;;  %v1316_v54 = vpop.permute.xlu1 %1315 }
 0x801   :  { %v901_v29 = vpop.f32.mrb[14].mxu1 }
 0x802   :  { %v4279_v30 = vpop.f32.mrb[15].mxu1 }
 0x805   :  { %v979_v31 = vpop.f32.mrb[16].mxu1 }
 0x806   :  { %v1061_v32 = vsel %vm5233_vm3, -1e+30, %v979_v31  ;;  %v4284_v33 = vpop.f32.mrb[17].mxu1 }
 0x807   :  { %v1063_v34 = vsel %vm402_vm4, %v1061_v32, -inf  ;;  %v1603_v33 = vld [vmem:[%s5892_s5 + $0x10] sm:$0xff] }
 0x808   :  { %1064 = vmax.xlane.f32.xlu0 %v1063_v34 }
 0x80c   :  { %1079 = vadd.xlane.f32.xlu0 %v1078_v35 }
 0x822   :  { %1085 = vrot.lane.b32.xlu0 %v5210_v0, %s4985_s16 }
 0x895   :  { %v1065_v37 = vpop.xlane.xlu0 %1064 }
 0x896   :  { %v1069_v39 = vsub.f32 %v1061_v32, %v1065_v37  ;;  %v1601_v32 = vld [vmem:[%s5892_s5] sm:$0xff] }
 0x897   :  { %v1605_v37 = vld [vmem:[%s5892_s5 + $0x20] sm:$0xff] }
 0x898   :  { %v1071_v41 = vmul.f32 1.442695, %v1069_v39  ;;  %v1606_v39 = vld [vmem:[%s5892_s5 + $0x28] sm:$0xff] }
 0x899   :  { %v1080_v42 = vpop.xlane.xlu0 %1079 }
 0x89a   :  { %4776 = vpow2.f32 %v1071_v41  ;;  %v4589_v41 = vpack.c.bf16 %v1606_v39, %v1605_v37  ;;  %v1724_v37 = vsub.s32 3, %v5185_v48  ;;  %v1730_v39 = vsub.s32 4, %v5185_v48 }
 0x89b   :  { %4778 = vrcp.f32 %v1080_v42  ;;  %v1607_v42 = vld [vmem:[%s5892_s5 + $0x30] sm:$0xff] }
 0x89d   :  { %v1086_v43 = vpop.permute.xlu0 %1085 }
 0x89e   :  { %4291 = vmatpush3.msra.mxu1 %v1086_v43  ;;  %v1608_v43 = vld [vmem:[%s5892_s5 + $0x38] sm:$0xff] }
 0x89f   :  { %4300 = vmatprep.subr.mxu1 %v4979_v36 }
 0x8a4   :  { %v4777_v45 = vpop.eup %4776 }
 0x8a5   :  { %v4779_v46 = vpop.eup %4778  ;;  %v1075_v49 = vsel %vm402_vm4, %v4777_v45, 0.0 }
 0x8a6   :  { %v1084_v53 = vmul.f32 %v4779_v46, %v4775_v1  ;;  %1076 = vadd.xlane.f32.xlu0 %v1075_v49  ;;  %v1604_v1 = vld [vmem:[%s5892_s5 + $0x18] sm:$0xff] }
 0x8a7   :  { %v4585_v35 = vpack.c.bf16 %v1604_v1, %v1603_v33 }
 0x8a8   :  { %4298 = vmatmul.mubr.msk.f32.vlgmr.msra.gmra.mrb[6].mxu0 %vm402_vm4, %v1084_v53 }
 0x8a9   :  { %4306 = vmatpush3.xpose.msk.msra.mxu0 %vm246_vm2, %v1318_v47  ;;  %4307 = vmatprep.mubr.msk.f32.mxu0 %vm4980_vm1, %v4979_v36 }
 0x8aa   :  { %4315 = vmatprep.subr.mxu0 %v4979_v36 }
 0x8ac   :  { %4308 = vmatmul.mubr.msk.f32.vlgmr.msra.gmra.mrb[8].mxu0 %vm246_vm2, %v1316_v54 }
 0x8ad   :  { %4317 = vmatprep.mubr.msk.f32.mxu0 %vm4980_vm1, %v4979_v36 }
 0x8bc   :  { %1237 = vrot.lane.b32.xlu0 %v5206_v63, %s4987_s13 }
 0x933   :  { %v1077_v55 = vpop.xlane.xlu0 %1076 }
 0x934   :  { %4780 = vrcp.f32 %v1077_v55 }
 0x937   :  { %v1238_v58 = vpop.permute.xlu0 %1237 }
 0x93e   :  { %v4781_v56 = vpop.eup %4780 }
 0x93f   :  { %v1083_v57 = vmul.f32 %v4781_v56, %v4777_v45 }
 0x941   :  { %4293 = vmatmul.mubr.msk.f32.vlgmr.msra.gmra.mrb[18].mxu1 %vm402_vm4, %v1083_v57 }
 0x942   :  { %4301 = vmatpush3.xpose.msk.msra.mxu1 %vm246_vm2, %v1240_v44  ;;  %4302 = vmatprep.mubr.msk.f32.mxu1 %vm4980_vm1, %v4979_v36  ;;  %v4593_v44 = vpack.c.bf16 %v1608_v43, %v1607_v42 }
 0x943   :  { %4310 = vmatprep.subr.mxu1 %v4979_v36 }
 0x945   :  { %4303 = vmatmul.mubr.msk.f32.vlgmr.msra.gmra.mrb[20].mxu1 %vm246_vm2, %v1238_v58 }
 0x946   :  { %4312 = vmatprep.mubr.msk.f32.mxu1 %vm4980_vm1, %v4979_v36 }
 0x97b   :  { %v1233_v63 = vpop.f32.mrb[6].mxu0 }
 0x97c   :  { %v4299_v59 = vpop.f32.mrb[7].mxu0 }
 0x97f   :  { %v1389_v60 = vpop.f32.mrb[8].mxu0 }
 0x980   :  { %v1394_v61 = vsel %vm5233_vm3, -1e+30, %v1389_v60  ;;  %v4309_v62 = vpop.f32.mrb[9].mxu0 }
 0x981   :  { %v1398_v5 = vsel %vm402_vm4, %v1394_v61, -inf }
 0x982   :  { %1399 = vmax.xlane.f32.xlu1 %v1398_v5 }
 0x993   :  { %1493 = vrot.lane.b32.xlu1 %v5216_v2, %s4987_s13 }
 0x997   :  { %1571 = vrot.lane.b32.xlu1 %v824_v25, %s4986_s12 }
 0x99b   :  { %1573 = vrot.lane.b32.xlu1 %v901_v29, %s4986_s12 }
 0x99f   :  { %1581 = vrot.lane.b32.xlu1 %v1233_v63, %s4984_s0 }
 0xa0f   :  { %v1400_v6 = vpop.xlane.xlu1 %1399 }
 0xa10   :  { %v1402_v7 = vsub.f32 %v1394_v61, %v1400_v6 }
 0xa12   :  { %v1405_v9 = vmul.f32 1.442695, %v1402_v7 }
 0xa13   :  { %v1494_v10 = vpop.permute.xlu1 %1493 }
 0xa14   :  { %4782 = vpow2.f32 %v1405_v9  ;;  %4316 = vmatpush3.msra.mxu0 %v1494_v10  ;;  %v1157_v11 = vpop.f32.mrb[18].mxu1 }
 0xa15   :  { %v4294_v12 = vpop.f32.mrb[19].mxu1 }
 0xa17   :  { %v1572_v47 = vpop.permute.xlu1 %1571 }
 0xa18   :  { %v1311_v13 = vpop.f32.mrb[20].mxu1  ;;  %v1593_v55 = vsel %vm246_vm2, %v5271_v38, %v1572_v47  ;;  %v1611_v38 = vsub.s32 2, %v5185_v48 }
 0xa19   :  { %v1393_v14 = vsel %vm5233_vm3, -1e+30, %v1311_v13  ;;  %v4304_v15 = vpop.f32.mrb[21].mxu1 }
 0xa1a   :  { %v1395_v2 = vsel %vm402_vm4, %v1393_v14, -inf  ;;  %v1612_v62 = vrot.slane %v5190_v51, %v1611_v38 }
 0xa1b   :  { %1396 = vmax.xlane.f32.xlu0 %v1395_v2  ;;  %v1574_v49 = vpop.permute.xlu1 %1573 }
 0xa1c   :  { %v1594_v57 = vsel %vm246_vm2, %v5273_v40, %v1574_v49 }
 0xa1e   :  { %v4783_v16 = vpop.eup %4782 }
 0xa1f   :  { %v1410_v17 = vsel %vm402_vm4, %v4783_v16, 0.0  ;;  %v1582_v53 = vpop.permute.xlu1 %1581 }
 0xa20   :  { %1411 = vadd.xlane.f32.xlu0 %v1410_v17  ;;  %v1597_v59 = vsel %vm1595_vm5, %v1594_v57, %v1582_v53 }
 0xaa8   :  { %v1397_v18 = vpop.xlane.xlu0 %1396 }
 0xaa9   :  { %v1401_v19 = vsub.f32 %v1393_v14, %v1397_v18 }
 0xaab   :  { %v1403_v20 = vmul.f32 1.442695, %v1401_v19 }
 0xaad   :  { %4784 = vpow2.f32 %v1403_v20  ;;  %v1412_v21 = vpop.xlane.xlu0 %1411 }
 0xaae   :  { %4786 = vrcp.f32 %v1412_v21  ;;  %v1735_v21 = vld [vmem:[#allocation7 + $0x8] sm:$0xff] }
 0xab7   :  { %v4785_v22 = vpop.eup %4784 }
 0xab8   :  { %v4787_v23 = vpop.eup %4786  ;;  %v1407_v24 = vsel %vm402_vm4, %v4785_v22, 0.0 }
 0xab9   :  { %v1416_v25 = vmul.f32 %v4787_v23, %v4783_v16  ;;  %1408 = vadd.xlane.f32.xlu0 %v1407_v24  ;;  %v1736_v23 = vld [vmem:[#allocation7 + $0x10] sm:$0xff]  ;;  %v1737_v24 = vld [vmem:[#allocation7 + $0x18] sm:$0xff] }
 0xabb   :  { %4318 = vmatmul.mubr.msk.f32.vlgmr.msra.gmra.mrb[10].mxu0 %vm402_vm4, %v1416_v25  ;;  %v4601_v25 = vpack.c.bf16 %v1737_v24, %v1736_v23 }
 0xacf   :  { %1417 = vrot.lane.b32.xlu0 %v5210_v0, %s4987_s13  ;;  %v1602_v0 = vld [vmem:[%s5892_s5 + $0x8] sm:$0xff] }
 0xad0   :  { %v4581_v34 = vpack.c.bf16 %v1602_v0, %v1601_v32 }
 0xad3   :  { %1579 = vrot.lane.b32.xlu0 %v1157_v11, %s4984_s0 }
 0xb46   :  { %v1409_v26 = vpop.xlane.xlu0 %1408 }
 0xb47   :  { %4788 = vrcp.f32 %v1409_v26  ;;  %v1738_v26 = vld [vmem:[#allocation7 + $0x20] sm:$0xff] }
 0xb4a   :  { %v1418_v27 = vpop.permute.xlu0 %1417 }
 0xb4b   :  { %4311 = vmatpush3.msra.mxu1 %v1418_v27  ;;  %v1739_v27 = vld [vmem:[#allocation7 + $0x28] sm:$0xff] }
 0xb4c   :  { %4582 = vmatprep.subr.bf16.mxu1 %v4581_v34 }
 0xb4e   :  { %v1580_v54 = vpop.permute.xlu0 %1579 }
 0xb4f   :  { %v1596_v58 = vsel %vm1595_vm5, %v1593_v55, %v1580_v54  ;;  %v1845_v55 = vld [vmem:[%s5894_s7] sm:$0xff] }
 0xb51   :  { %v4789_v28 = vpop.eup %4788 }
 0xb52   :  { %v1415_v29 = vmul.f32 %v4789_v28, %v4785_v22  ;;  %v4605_v28 = vpack.c.bf16 %v1739_v27, %v1738_v26 }
 0xb54   :  { %4313 = vmatmul.mubr.msk.f32.vlgmr.msra.gmra.mrb[22].mxu1 %vm402_vm4, %v1415_v29  ;;  %v1740_v29 = vld [vmem:[#allocation7 + $0x30] sm:$0xff] }
 0xb55   :  { %4584 = vmatpush3.bf16.msra.mxu1 %v4581_v34 }
 0xb56   :  { %4586 = vmatprep.subr.bf16.mxu1 %v4585_v35 }
 0xb59   :  { %4588 = vmatpush3.bf16.msra.mxu1 %v4585_v35 }
 0xb5a   :  { %4590 = vmatprep.subr.bf16.mxu1 %v4589_v41 }
 0xb5d   :  { %4592 = vmatpush3.bf16.msra.mxu1 %v4589_v41  ;;  %v1725_v41 = vrot.slane %v5190_v51, %v1724_v37 }
 0xb5e   :  { %4594 = vmatprep.subr.bf16.mxu1 %v4593_v44 }
 0xb61   :  { %4596 = vmatpush3.bf16.msra.mxu1 %v4593_v44  ;;  %v1731_v44 = vrot.slane %v5190_v51, %v1730_v39 }
 0xb8e   :  { %v1565_v30 = vpop.f32.mrb[10].mxu0 }
 0xb8f   :  { %1589 = vrot.lane.b32.xlu1 %v1565_v30, %s4983_s11  ;;  %v4319_v31 = vpop.f32.mrb[11].mxu0  ;;  %v1741_v30 = vld [vmem:[#allocation7 + $0x38] sm:$0xff] }
 0xb90   :  { %v4609_v31 = vpack.c.bf16 %v1741_v30, %v1740_v29 }
 0xc01   :  { %v1590_v56 = vpop.permute.xlu1 %1589 }
 0xc02   :  { %v1600_v61 = vsel %vm1598_vm6, %v1597_v59, %v1590_v56  ;;  %v1846_v56 = vld [vmem:[%s5894_s7 + $0x8] sm:$0xff] }
 0xc03   :  { %v4613_v57 = vpack.c.bf16 %v1846_v56, %v1845_v55 }
 0xc05   :  { %4614 = vmatprep.subr.bf16.mxu1 %v4613_v57 }
 0xc27   :  { %v1489_v45 = vpop.f32.mrb[22].mxu1 }
 0xc28   :  { %1587 = vrot.lane.b32.xlu0 %v1489_v45, %s4983_s11  ;;  %v4314_v46 = vpop.f32.mrb[23].mxu1 }
 0xc9a   :  { %v1588_v63 = vpop.permute.xlu0 %1587 }
 0xc9b   :  { %v1599_v60 = vsel %vm1598_vm6, %v1596_v58, %v1588_v63  ;;  %v1847_v58 = vld [vmem:[%s5894_s7 + $0x10] sm:$0xff]  ;;  %v1848_v63 = vld [vmem:[%s5894_s7 + $0x18] sm:$0xff] }
 0xc9c   :  { %4336 = vmatprep.mubr.msk.f32.mxu1 %vm104_vm0, %v1599_v60  ;;  %v4617_v59 = vpack.c.bf16 %v1848_v63, %v1847_v58  ;;  %v1849_v60 = vld [vmem:[%s5894_s7 + $0x20] sm:$0xff] }
 0xc9d   :  { %4337 = vmatmul.mubr.msk.f32.vlgmr.msra.gmra.mrb[24].mxu1 %vm104_vm0, %v1600_v61  ;;  %v1850_v61 = vld [vmem:[%s5894_s7 + $0x28] sm:$0xff] }
 0xc9e   :  { %4616 = vmatpush3.bf16.msra.mxu1 %v4613_v57 }
 0xc9f   :  { %4618 = vmatprep.subr.bf16.mxu1 %v4617_v59 }
 0xca2   :  { %4620 = vmatpush3.bf16.msra.mxu1 %v4617_v59 }
 0xd70   :  { %v4338_v40 = vpop.f32.mrb[24].mxu1 }
 0xd71   :  { %v1691_v5 = vadd.f32 %v4338_v40, %v1612_v62  ;;  %v1685_v6 = vpop.f32.mrb[25].mxu1  ;;  %v1851_v40 = vld [vmem:[%s5894_s7 + $0x30] sm:$0xff] }
 0xd72   :  { %v1686_v7 = vadd.f32 %v1685_v6, %v1612_v62  ;;  %v4621_v62 = vpack.c.bf16 %v1850_v61, %v1849_v60 }
 0xd73   :  { %v1695_v9 = vadd.f32 %v1691_v5, %v5124_v4  ;;  %v1852_v5 = vld [vmem:[%s5894_s7 + $0x38] sm:$0xff] }
 0xd74   :  { %v1694_v10 = vadd.f32 %v1686_v7, %v5122_v3  ;;  %v1734_v3 = vld [vmem:[#allocation7] sm:$0xff]  ;;  %4622 = vmatprep.subr.bf16.mxu1 %v4621_v62  ;;  %v4625_v6 = vpack.c.bf16 %v1852_v5, %v1851_v40 }
 0xd75   :  { %v1699_v11 = vsel %vm104_vm0, %v1695_v9, 0.0  ;;  %v4597_v22 = vpack.c.bf16 %v1735_v21, %v1734_v3  ;;  %4624 = vmatpush3.bf16.msra.mxu1 %v4621_v62  ;;  %v1853_v7 = vld [vmem:[%s5894_s7 + $0x40] sm:$0xff] }
 0xd76   :  { %1700 = vadd.xlane.f32.xlu1 %v1699_v11  ;;  %v1696_v12 = vsel %vm104_vm0, %v1694_v10, 0.0  ;;  %4626 = vmatprep.subr.bf16.mxu1 %v4625_v6 }
 0xd77   :  { %1697 = vadd.xlane.f32.xlu0 %v1696_v12  ;;  %4598 = vmatprep.subr.bf16.mxu0 %v4597_v22  ;;  %v1856_v12 = vld [vmem:[%s5894_s7 + $0x58] sm:$0xff] }
 0xd78   :  { %4600 = vmatpush3.bf16.msra.mxu0 %v4597_v22 }
 0xd79   :  { %4602 = vmatprep.subr.bf16.mxu0 %v4601_v25  ;;  %4628 = vmatpush3.bf16.msra.mxu1 %v4625_v6 }
 0xd7c   :  { %4604 = vmatpush3.bf16.msra.mxu0 %v4601_v25 }
 0xd7d   :  { %4606 = vmatprep.subr.bf16.mxu0 %v4605_v28 }
 0xd80   :  { %4608 = vmatpush3.bf16.msra.mxu0 %v4605_v28 }
 0xd81   :  { %4610 = vmatprep.subr.bf16.mxu0 %v4609_v31 }
 0xd84   :  { %4612 = vmatpush3.bf16.msra.mxu0 %v4609_v31 }
 0xe03   :  { %v1701_v13 = vpop.xlane.xlu1 %1700 }
 0xe04   :  { %v1703_v14 = vmul.f32 0.015625, %v1701_v13  ;;  %v1698_v15 = vpop.xlane.xlu0 %1697 }
 0xe05   :  { %v1702_v2 = vmul.f32 0.015625, %v1698_v15  ;;  %v1858_v15 = vld [vmem:[%s5894_s7 + $0x68] sm:$0xff] }
 0xe06   :  { %v1705_v16 = vsub.f32 %v1695_v9, %v1703_v14  ;;  %v1854_v9 = vld [vmem:[%s5894_s7 + $0x48] sm:$0xff]  ;;  %v1857_v14 = vld [vmem:[%s5894_s7 + $0x60] sm:$0xff] }
 0xe07   :  { %v1704_v17 = vsub.f32 %v1694_v10, %v1702_v2  ;;  %v1855_v10 = vld [vmem:[%s5894_s7 + $0x50] sm:$0xff]  ;;  %v4629_v11 = vpack.c.bf16 %v1854_v9, %v1853_v7  ;;  %v4637_v2 = vpack.c.bf16 %v1858_v15, %v1857_v14  ;;  %v4020_v7 = vld [vmem:[%s5891_s4 + $0x88] sm:$0xff]  ;;  %v4022_v9 = vld [vmem:[%s5891_s4 + $0x98] sm:$0xff] }
 0xe08   :  { %v1707_v20 = vmul.f32 %v1705_v16, %v1705_v16  ;;  %v4633_v13 = vpack.c.bf16 %v1856_v12, %v1855_v10  ;;  %v4645_v10 = vpack.c.bf16 %v4022_v9, %v4020_v7  ;;  %v4021_v12 = vld [vmem:[%s5891_s4 + $0x90] sm:$0xff]  ;;  %v4024_v14 = vld [vmem:[%s5891_s4 + $0xa8] sm:$0xff]  ;;  %v4026_v15 = vld [vmem:[%s5891_s4 + $0xb8] sm:$0xff] }
 0xe09   :  { %v1706_v18 = vmul.f32 %v1704_v17, %v1704_v17  ;;  %4630 = vmatprep.subr.bf16.mxu1 %v4629_v11 }
 0xe0a   :  { %v1711_v4 = vsel %vm104_vm0, %v1707_v20, 0.0  ;;  %4632 = vmatpush3.bf16.msra.mxu1 %v4629_v11  ;;  %v4019_v11 = vld [vmem:[%s5891_s4 + $0x80] sm:$0xff]  ;;  %4646 = vmatprep.subr.bf16.mxu0 %v4645_v10 }
 0xe0b   :  { %v1708_v19 = vsel %vm104_vm0, %v1706_v18, 0.0  ;;  %4634 = vmatprep.subr.bf16.mxu1 %v4633_v13 }
 0xe0c   :  { %1709 = vadd.xlane.f32.xlu0 %v1708_v19  ;;  %v5484_v19 = vld [vmem:[%s5890_s3] sm:$0x3] }
 0xe0d   :  { %v1745_v20 = vrot.slane %v5484_v19, %v5188_v50 }
 0xe0e   :  { %4636 = vmatpush3.bf16.msra.mxu1 %v4633_v13  ;;  %v4647_v13 = vpack.c.bf16 %v4021_v12, %v4019_v11 }
 0xe0f   :  { %4638 = vmatprep.subr.bf16.mxu1 %v4637_v2 }
 0xe10   :  { %1712 = vadd.xlane.f32.xlu0 %v1711_v4 }
 0xe12   :  { %4640 = vmatpush3.bf16.msra.mxu1 %v4637_v2  ;;  %v4649_v2 = vpack.c.bf16 %v4026_v15, %v4024_v14 }
 0xe99   :  { %v1710_v32 = vpop.xlane.xlu0 %1709 }
 0xe9a   :  { %v1714_v0 = vmul.f32 0.015625, %v1710_v32 }
 0xe9c   :  { %v1716_v33 = vadd.f32 1e-05, %v1714_v0 }
 0xe9d   :  { %v1713_v34 = vpop.xlane.xlu0 %1712 }
 0xe9e   :  { %4790 = vrsqrt.f32 %v1716_v33  ;;  %v1715_v1 = vmul.f32 0.015625, %v1713_v34 }
 0xea0   :  { %v1717_v35 = vadd.f32 1e-05, %v1715_v1 }
 0xea2   :  { %4792 = vrsqrt.f32 %v1717_v35 }
 0xea8   :  { %v4791_v42 = vpop.eup %4790 }
 0xea9   :  { %v1720_v43 = vmul.f32 %v4791_v42, %v1704_v17  ;;  %v1860_v17 = vld [vmem:[%s5894_s7 + $0x78] sm:$0xff] }
 0xeab   :  { %v1726_v45 = vmul.f32 %v1725_v41, %v1720_v43 }
 0xeac   :  { %v4793_v46 = vpop.eup %4792 }
 0xead   :  { %v1721_v47 = vmul.f32 %v4793_v46, %v1705_v16  ;;  %v5423_v49 = vadd.f32 %v1731_v44, %v1726_v45  ;;  %v1859_v16 = vld [vmem:[%s5894_s7 + $0x70] sm:$0xff] }
 0xeae   :  { %v4641_v18 = vpack.c.bf16 %v1860_v17, %v1859_v16  ;;  %v4023_v16 = vld [vmem:[%s5891_s4 + $0xa0] sm:$0xff]  ;;  %v4025_v17 = vld [vmem:[%s5891_s4 + $0xb0] sm:$0xff] }
 0xeaf   :  { %v1727_v53 = vmul.f32 %v1725_v41, %v1721_v47  ;;  %4355 = vmatprep.mubr.msk.f32.mxu0 %vm104_vm0, %v5423_v49 }
 0xeb0   :  { %4642 = vmatprep.subr.bf16.mxu1 %v4641_v18 }
 0xeb1   :  { %v5427_v54 = vadd.f32 %v1731_v44, %v1727_v53  ;;  %4644 = vmatpush3.bf16.msra.mxu1 %v4641_v18  ;;  %v1940_v44 = vsub.s32 5, %v5185_v48  ;;  %v4651_v18 = vpack.c.bf16 %v4025_v17, %v4023_v16 }
 0xeb2   :  { %4408 = vmatprep.subr.mxu1 %v4979_v36 }
 0xeb3   :  { %4356 = vmatmul.mubr.msk.f32.vlgmr.msra.gmra.mrb[12].mxu0 %vm104_vm0, %v5427_v54  ;;  %v1941_v45 = vrot.slane %v5190_v51, %v1940_v44 }
 0xeb4   :  { %2069 = vmatprep.mubr.f32.mxu0 %v4979_v36  ;;  %4648 = vmatpush1.bf16.msra.mxu0 %v4647_v13 }
 0xeb5   :  { %4650 = vmatprep.subr.bf16.mxu0 %v4649_v2 }
 0xeb8   :  { %4652 = vmatpush1.bf16.msra.mxu0 %v4651_v18 }
 0xf86   :  { %v4357_v4 = vpop.f32.mrb[12].mxu0 }
 0xf87   :  { %v1824_v3 = vadd.f32 %v4357_v4, %v1745_v20  ;;  %v1818_v21 = vpop.f32.mrb[13].mxu0  ;;  %v4030_v4 = vld [vmem:[%s5891_s4 + $0xd8] sm:$0xff] }
 0xf88   :  { %v1819_v22 = vadd.f32 %v1818_v21, %v1745_v20  ;;  %v4028_v20 = vld [vmem:[%s5891_s4 + $0xc8] sm:$0xff]  ;;  %v4027_v21 = vld [vmem:[%s5891_s4 + $0xc0] sm:$0xff] }
 0xf89   :  { %v1828_v23 = vmul.f32 %v1824_v3, %v1824_v3 }
 0xf8a   :  { %v1827_v24 = vmul.f32 %v1819_v22, %v1819_v22 }
 0xf8b   :  { %v1830_v25 = vmul.f32 %v1828_v23, %v1824_v3 }
 0xf8c   :  { %v1829_v26 = vmul.f32 %v1827_v24, %v1819_v22  ;;  %v4032_v24 = vld [vmem:[%s5891_s4 + $0xe8] sm:$0xff] }
 0xf8d   :  { %v1832_v27 = vmul.f32 0.044715, %v1830_v25  ;;  %v4034_v25 = vld [vmem:[%s5891_s4 + $0xf8] sm:$0xff] }
 0xf8e   :  { %v1831_v28 = vmul.f32 0.044715, %v1829_v26  ;;  %v4031_v26 = vld [vmem:[%s5891_s4 + $0xe0] sm:$0xff] }
 0xf8f   :  { %v1834_v29 = vadd.f32 %v1832_v27, %v1824_v3  ;;  %v4657_v27 = vpack.c.bf16 %v4034_v25, %v4032_v24 }
 0xf90   :  { %v1833_v30 = vadd.f32 %v1831_v28, %v1819_v22  ;;  %v4033_v28 = vld [vmem:[%s5891_s4 + $0xf0] sm:$0xff] }
 0xf91   :  { %v1836_v31 = vmul.f32 0.7978846, %v1834_v29  ;;  %v4659_v29 = vpack.c.bf16 %v4033_v28, %v4031_v26 }
 0xf92   :  { %v1835_v32 = vmul.f32 0.7978846, %v1833_v30 }
 0xf93   :  { %4794 = vtanh.f32 %v1836_v31 }
 0xf94   :  { %4796 = vtanh.f32 %v1835_v32 }
 0xf9d   :  { %v4795_v0 = vpop.eup %4794 }
 0xf9e   :  { %v4797_v33 = vpop.eup %4796  ;;  %v1840_v34 = vadd.f32 1.0, %v4795_v0 }
 0xf9f   :  { %v1839_v1 = vadd.f32 1.0, %v4797_v33 }
 0xfa0   :  { %v1842_v35 = vmul.f32 0.5, %v1840_v34 }
 0xfa1   :  { %v1841_v41 = vmul.f32 0.5, %v1839_v1  ;;  %v1972_v1 = vsub.s32 6, %v5185_v48 }
 0xfa2   :  { %v1844_v43 = vmul.f32 %v1842_v35, %v1824_v3  ;;  %v4653_v3 = vpack.c.bf16 %v4030_v4, %v4028_v20  ;;  %v1978_v35 = vsub.s32 7, %v5185_v48  ;;  %v3882_v48 = vld [vmem:[#allocation8 + $0x10] sm:$0xff] }
 0xfa3   :  { %v1843_v42 = vmul.f32 %v1841_v41, %v1819_v22  ;;  %v4029_v22 = vld [vmem:[%s5891_s4 + $0xd0] sm:$0xff] }
 0xfa4   :  { %v4655_v23 = vpack.c.bf16 %v4029_v22, %v4027_v21  ;;  %4654 = vmatprep.subr.bf16.mxu0 %v4653_v3 }
 0xfa5   :  { %4390 = vmatprep.mubr.f32.mxu1 %v1843_v42  ;;  %v4854_v42 = vld [vmem:[#allocation5] sm:$0xff] }
 0xfa6   :  { %4391 = vmatmul.mubr.f32.vlgmr.msra.gmra.mrb[26].mxu1 %v1844_v43  ;;  %4656 = vmatpush1.bf16.msra.mxu0 %v4655_v23  ;;  %v1973_v43 = vrot.slane %v4854_v42, %v1972_v1 }
 0xfa7   :  { %4410 = vmatprep.mubr.msk.f32.mxu1 %vm4980_vm1, %v4979_v36  ;;  %4658 = vmatprep.subr.bf16.mxu0 %v4657_v27 }
 0xfaa   :  { %4660 = vmatpush1.bf16.msra.mxu0 %v4659_v29 }
 0xfab   :  { %4393 = vmatprep.subr.mxu0 %v4979_v36 }
0x1079   :  { %v4392_v46 = vpop.f32.mrb[26].mxu1 }
0x107a   :  { %v1937_v47 = vadd.f32 %v4392_v46, %v5427_v54  ;;  %v1927_v53 = vpop.f32.mrb[27].mxu1 }
0x107b   :  { %v1936_v55 = vadd.f32 %v1927_v53, %v5423_v49 }
0x107c   :  { %v5496_v56 = vadd.f32 %v1941_v45, %v1937_v47  ;;  %v1979_v47 = vrot.slane %v4854_v42, %v1978_v35 }
0x107d   :  { %v5498_v57 = vadd.f32 %v1941_v45, %v1936_v55 }
0x107e   :  { %v1947_v58 = vsel %vm104_vm0, %v5496_v56, 0.0 }
0x107f   :  { %1948 = vadd.xlane.f32.xlu1 %v1947_v58  ;;  %v1944_v63 = vsel %vm104_vm0, %v5498_v57, 0.0 }
0x1080   :  { %1945 = vadd.xlane.f32.xlu0 %v1944_v63 }
0x110c   :  { %v1949_v59 = vpop.xlane.xlu1 %1948 }
0x110d   :  { %v1951_v51 = vmul.f32 0.015625, %v1949_v59  ;;  %v1946_v60 = vpop.xlane.xlu0 %1945 }
0x110e   :  { %v1950_v61 = vmul.f32 0.015625, %v1946_v60 }
0x110f   :  { %v1953_v54 = vsub.f32 %v5496_v56, %v1951_v51 }
0x1110   :  { %v1952_v49 = vsub.f32 %v5498_v57, %v1950_v61 }
0x1111   :  { %v1955_v62 = vmul.f32 %v1953_v54, %v1953_v54 }
0x1112   :  { %v1954_v40 = vmul.f32 %v1952_v49, %v1952_v49 }
0x1113   :  { %v1959_v5 = vsel %vm104_vm0, %v1955_v62, 0.0 }
0x1114   :  { %1960 = vadd.xlane.f32.xlu1 %v1959_v5  ;;  %v1956_v6 = vsel %vm104_vm0, %v1954_v40, 0.0 }
0x1115   :  { %1957 = vadd.xlane.f32.xlu0 %v1956_v6 }
0x11a1   :  { %v1961_v30 = vpop.xlane.xlu1 %1960 }
0x11a2   :  { %v1963_v31 = vmul.f32 0.015625, %v1961_v30  ;;  %v1958_v32 = vpop.xlane.xlu0 %1957 }
0x11a3   :  { %v1962_v0 = vmul.f32 0.015625, %v1958_v32 }
0x11a4   :  { %v1965_v33 = vadd.f32 1e-05, %v1963_v31 }
0x11a5   :  { %v1964_v34 = vadd.f32 1e-05, %v1962_v0 }
0x11a6   :  { %4798 = vrsqrt.f32 %v1965_v33 }
0x11a7   :  { %4800 = vrsqrt.f32 %v1964_v34 }
0x11b0   :  { %v4799_v41 = vpop.eup %4798 }
0x11b1   :  { %v4801_v45 = vpop.eup %4800  ;;  %v1969_v53 = vmul.f32 %v4799_v41, %v1953_v54 }
0x11b2   :  { %v1968_v46 = vmul.f32 %v4801_v45, %v1952_v49 }
0x11b3   :  { %v1975_v63 = vmul.f32 %v1973_v43, %v1969_v53 }
0x11b4   :  { %v1974_v55 = vmul.f32 %v1973_v43, %v1968_v46 }
0x11b5   :  { %v1981_v59 = vadd.f32 %v1979_v47, %v1975_v63 }
0x11b6   :  { %v1980_v58 = vadd.f32 %v1979_v47, %v1974_v55 }
0x11b8   :  { %4035 = vmatmul.mubr.msk.f32.vlgmr.msra.gmra.mrb[14].mxu0 %vm104_vm0, %v1980_v58 }
0x11b9   :  { %2075 = vmatprep.mubr.f32.mxu0 %v4979_v36 }
0x11bc   :  { %4036 = vmatmul.mubr.msk.f32.gmra.mrb[16].mxu0 %vm104_vm0, %v1981_v59 }
0x11bd   :  { %4395 = vmatprep.mubr.msk.f32.mxu0 %vm4980_vm1, %v4979_v36 }
0x128b   :  { %v5566_v51 = vpop.f32.mrb[14].mxu0 }
0x128c   :  { %2083 = vrot.lane.b32.xlu0 %v5566_v51, %s4981_s29  ;;  %v5570_v60 = vpop.f32.mrb[15].mxu0 }
0x128f   :  { %v5572_v61 = vpop.f32.mrb[16].mxu0 }
0x1290   :  { %2160 = vrot.lane.b32.xlu1 %v5572_v61, %s4981_s29  ;;  %v5576_v54 = vpop.f32.mrb[17].mxu0 }
0x1291   :  { %4409 = vmatpush3.msra.mxu1 %v5576_v54 }
0x1292   :  { %4418 = vmatprep.subr.mxu1 %v4979_v36 }
0x12fe   :  { %v2084_v49 = vpop.permute.xlu0 %2083 }
0x12ff   :  { %4394 = vmatpush3.xpose.msk.msra.mxu0 %vm246_vm2, %v2084_v49 }
0x1300   :  { %4398 = vmatprep.subr.mxu0 %v4979_v36 }
0x1302   :  { %4396 = vmatmul.mubr.msk.f32.vlgmr.msra.gmra.mrb[18].mxu0 %vm246_vm2, %v5566_v51  ;;  %v2161_v62 = vpop.permute.xlu1 %2160 }
0x1303   :  { %4399 = vmatpush3.xpose.msk.msra.mxu0 %vm246_vm2, %v2161_v62  ;;  %4400 = vmatprep.mubr.msk.f32.mxu0 %vm4980_vm1, %v4979_v36 }
0x1304   :  { %4403 = vmatprep.subr.mxu0 %v4979_v36 }
0x1306   :  { %4401 = vmatmul.mubr.msk.f32.vlgmr.msra.gmra.mrb[20].mxu0 %vm246_vm2, %v5572_v61 }
0x1307   :  { %4404 = vmatpush3.msra.mxu0 %v5570_v60  ;;  %4405 = vmatprep.mubr.msk.f32.mxu0 %vm4980_vm1, %v4979_v36 }
0x1308   :  { %4413 = vmatprep.subr.mxu0 %v4979_v36 }
0x13d5   :  { %v2155_v40 = vpop.f32.mrb[18].mxu0 }
0x13d6   :  { %v2236_v5 = vsel %vm5233_vm3, -1e+30, %v2155_v40  ;;  %v4397_v6 = vpop.f32.mrb[19].mxu0 }
0x13d7   :  { %v2238_v7 = vsel %vm402_vm4, %v2236_v5, -inf }
0x13d8   :  { %2239 = vmax.xlane.f32.xlu1 %v2238_v7 }
0x13d9   :  { %v2232_v9 = vpop.f32.mrb[20].mxu0 }
0x13da   :  { %v2237_v10 = vsel %vm5233_vm3, -1e+30, %v2232_v9  ;;  %v4402_v11 = vpop.f32.mrb[21].mxu0 }
0x13db   :  { %v2241_v12 = vsel %vm402_vm4, %v2237_v10, -inf }
0x13dc   :  { %2242 = vmax.xlane.f32.xlu0 %v2241_v12 }
0x13e9   :  { %2486 = vrot.lane.b32.xlu1 %v5572_v61, %s4983_s11 }
0x13ed   :  { %2406 = vrot.lane.b32.xlu1 %v5566_v51, %s4982_s30 }
0x1465   :  { %v2240_v13 = vpop.xlane.xlu1 %2239 }
0x1466   :  { %v2244_v14 = vsub.f32 %v2236_v5, %v2240_v13 }
0x1468   :  { %v2246_v15 = vmul.f32 1.442695, %v2244_v14 }
0x1469   :  { %v2243_v2 = vpop.xlane.xlu0 %2242  ;;  %v2487_v21 = vpop.permute.xlu1 %2486 }
0x146a   :  { %4802 = vpow2.f32 %v2246_v15  ;;  %v2245_v16 = vsub.f32 %v2237_v10, %v2243_v2 }
0x146c   :  { %v2248_v17 = vmul.f32 1.442695, %v2245_v16 }
0x146d   :  { %v2407_v22 = vpop.permute.xlu1 %2406 }
0x146e   :  { %4804 = vpow2.f32 %v2248_v17 }
0x1474   :  { %v4803_v18 = vpop.eup %4802 }
0x1475   :  { %v2250_v20 = vsel %vm402_vm4, %v4803_v18, 0.0 }
0x1476   :  { %2251 = vadd.xlane.f32.xlu0 %v2250_v20 }
0x1478   :  { %v4805_v4 = vpop.eup %4804 }
0x1479   :  { %v2253_v3 = vsel %vm402_vm4, %v4805_v4, 0.0 }
0x147a   :  { %2254 = vadd.xlane.f32.xlu1 %v2253_v3 }
0x148b   :  { %2484 = vrot.lane.b32.xlu1 %v5572_v61, %s4982_s30 }
0x148c   :  { %2408 = vrot.lane.b32.xlu0 %v5566_v51, %s4983_s11 }
0x1503   :  { %v2252_v23 = vpop.xlane.xlu0 %2251 }
0x1504   :  { %4806 = vrcp.f32 %v2252_v23 }
0x1507   :  { %v2255_v24 = vpop.xlane.xlu1 %2254  ;;  %v2409_v27 = vpop.permute.xlu0 %2408 }
0x1508   :  { %4808 = vrcp.f32 %v2255_v24 }
0x150b   :  { %v2485_v30 = vpop.permute.xlu1 %2484 }
0x150e   :  { %v4807_v25 = vpop.eup %4806 }
0x150f   :  { %v2258_v26 = vmul.f32 %v4807_v25, %v4803_v18 }
0x1511   :  { %4406 = vmatmul.mubr.msk.f32.vlgmr.msra.gmra.mrb[22].mxu0 %vm402_vm4, %v2258_v26 }
0x1512   :  { %v4809_v28 = vpop.eup %4808  ;;  %4414 = vmatpush3.xpose.msk.msra.mxu0 %vm246_vm2, %v2409_v27  ;;  %4415 = vmatprep.mubr.msk.f32.mxu0 %vm4980_vm1, %v4979_v36 }
0x1513   :  { %v2259_v29 = vmul.f32 %v4809_v28, %v4805_v4  ;;  %4423 = vmatprep.subr.mxu0 %v4979_v36 }
0x1515   :  { %4411 = vmatmul.mubr.msk.f32.vlgmr.msra.gmra.mrb[28].mxu1 %vm402_vm4, %v2259_v29  ;;  %4416 = vmatmul.mubr.msk.f32.vlgmr.msra.gmra.mrb[24].mxu0 %vm246_vm2, %v2407_v22 }
0x1516   :  { %4419 = vmatpush3.xpose.msk.msra.mxu1 %vm246_vm2, %v2487_v21  ;;  %4420 = vmatprep.mubr.msk.f32.mxu1 %vm4980_vm1, %v4979_v36 }
0x1517   :  { %4428 = vmatprep.subr.mxu1 %v4979_v36  ;;  %4425 = vmatprep.mubr.msk.f32.mxu0 %vm4980_vm1, %v4979_v36 }
0x1519   :  { %4421 = vmatmul.mubr.msk.f32.vlgmr.msra.gmra.mrb[30].mxu1 %vm246_vm2, %v2485_v30 }
0x151a   :  { %4430 = vmatprep.mubr.msk.f32.mxu1 %vm4980_vm1, %v4979_v36 }
0x15e4   :  { %v5626_v31 = vpop.f32.mrb[22].mxu0 }
0x15e5   :  { %v4407_v32 = vpop.f32.mrb[23].mxu0 }
0x15e8   :  { %v5628_v0 = vpop.f32.mrb[28].mxu1  ;;  %v2480_v33 = vpop.f32.mrb[24].mxu0 }
0x15e9   :  { %v2562_v34 = vsel %vm5233_vm3, -1e+30, %v2480_v33  ;;  %v4412_v35 = vpop.f32.mrb[29].mxu1  ;;  %v4417_v41 = vpop.f32.mrb[25].mxu0 }
0x15ea   :  { %v2564_v42 = vsel %vm402_vm4, %v2562_v34, -inf }
0x15eb   :  { %2565 = vmax.xlane.f32.xlu0 %v2564_v42 }
0x15ec   :  { %v2558_v43 = vpop.f32.mrb[30].mxu1 }
0x15ed   :  { %v2563_v45 = vsel %vm5233_vm3, -1e+30, %v2558_v43  ;;  %v4422_v46 = vpop.f32.mrb[31].mxu1 }
0x15ee   :  { %v2567_v47 = vsel %vm402_vm4, %v2563_v45, -inf }
0x15ef   :  { %2568 = vmax.xlane.f32.xlu1 %v2567_v47 }
0x1600   :  { %2664 = vrot.lane.b32.xlu1 %v5576_v54, %s4982_s30 }
0x1601   :  { %2587 = vrot.lane.b32.xlu0 %v5570_v60, %s4982_s30 }
0x1604   :  { %2742 = vrot.lane.b32.xlu1 %v5566_v51, %s4984_s0 }
0x1608   :  { %2820 = vrot.lane.b32.xlu1 %v5572_v61, %s4984_s0 }
0x160c   :  { %2818 = vrot.lane.b32.xlu1 %v5572_v61, %s4985_s16 }
0x1678   :  { %v2566_v53 = vpop.xlane.xlu0 %2565 }
0x1679   :  { %v2570_v55 = vsub.f32 %v2562_v34, %v2566_v53 }
0x167b   :  { %v2572_v58 = vmul.f32 1.442695, %v2570_v55 }
0x167c   :  { %v2569_v63 = vpop.xlane.xlu1 %2568  ;;  %v2588_v59 = vpop.permute.xlu0 %2587 }
0x167d   :  { %4810 = vpow2.f32 %v2572_v58  ;;  %v2571_v49 = vsub.f32 %v2563_v45, %v2569_v63  ;;  %4424 = vmatpush3.msra.mxu0 %v2588_v59 }
0x167e   :  { %4433 = vmatprep.subr.mxu0 %v4979_v36 }
0x167f   :  { %v2574_v62 = vmul.f32 1.442695, %v2571_v49 }
0x1680   :  { %v2665_v40 = vpop.permute.xlu1 %2664 }
0x1681   :  { %4812 = vpow2.f32 %v2574_v62  ;;  %4429 = vmatpush3.msra.mxu1 %v2665_v40 }
0x1682   :  { %4438 = vmatprep.subr.mxu1 %v4979_v36 }
0x1684   :  { %v2743_v12 = vpop.permute.xlu1 %2742 }
0x1687   :  { %v4811_v5 = vpop.eup %4810 }
0x1688   :  { %v2576_v6 = vsel %vm402_vm4, %v4811_v5, 0.0  ;;  %v2821_v2 = vpop.permute.xlu1 %2820 }
0x1689   :  { %2577 = vadd.xlane.f32.xlu0 %v2576_v6 }
0x168b   :  { %v4813_v7 = vpop.eup %4812 }
0x168c   :  { %v2579_v9 = vsel %vm402_vm4, %v4813_v7, 0.0  ;;  %v2819_v18 = vpop.permute.xlu1 %2818 }
0x168d   :  { %2580 = vadd.xlane.f32.xlu0 %v2579_v9 }
0x16a3   :  { %2740 = vrot.lane.b32.xlu0 %v5566_v51, %s4985_s16 }
0x1716   :  { %v2578_v10 = vpop.xlane.xlu0 %2577 }
0x1717   :  { %4814 = vrcp.f32 %v2578_v10 }
0x171a   :  { %v2581_v11 = vpop.xlane.xlu0 %2580 }
0x171b   :  { %4816 = vrcp.f32 %v2581_v11 }
0x171e   :  { %v2741_v17 = vpop.permute.xlu0 %2740 }
0x1721   :  { %v4815_v13 = vpop.eup %4814 }
0x1722   :  { %v2584_v14 = vmul.f32 %v4815_v13, %v4811_v5 }
0x1724   :  { %4426 = vmatmul.mubr.msk.f32.vlgmr.msra.gmra.mrb[26].mxu0 %vm402_vm4, %v2584_v14 }
0x1725   :  { %v4817_v15 = vpop.eup %4816  ;;  %4434 = vmatpush3.xpose.msk.msra.mxu0 %vm246_vm2, %v2743_v12  ;;  %4435 = vmatprep.mubr.msk.f32.mxu0 %vm4980_vm1, %v4979_v36 }
0x1726   :  { %v2585_v16 = vmul.f32 %v4817_v15, %v4813_v7  ;;  %4443 = vmatprep.subr.mxu0 %v4979_v36 }
0x1728   :  { %4431 = vmatmul.mubr.msk.f32.vlgmr.msra.gmra.mrb[32].mxu1 %vm402_vm4, %v2585_v16  ;;  %4436 = vmatmul.mubr.msk.f32.vlgmr.msra.gmra.mrb[28].mxu0 %vm246_vm2, %v2741_v17 }
0x1729   :  { %4439 = vmatpush3.xpose.msk.msra.mxu1 %vm246_vm2, %v2821_v2  ;;  %4440 = vmatprep.mubr.msk.f32.mxu1 %vm4980_vm1, %v4979_v36 }
0x172a   :  { %4448 = vmatprep.subr.mxu1 %v4979_v36  ;;  %4445 = vmatprep.mubr.msk.f32.mxu0 %vm4980_vm1, %v4979_v36 }
0x172c   :  { %4441 = vmatmul.mubr.msk.f32.vlgmr.msra.gmra.mrb[34].mxu1 %vm246_vm2, %v2819_v18 }
0x172d   :  { %4450 = vmatprep.mubr.msk.f32.mxu1 %vm4980_vm1, %v4979_v36 }
0x17f7   :  { %v5668_v20 = vpop.f32.mrb[26].mxu0 }
0x17f8   :  { %v4427_v4 = vpop.f32.mrb[27].mxu0 }
0x17fb   :  { %v5670_v3 = vpop.f32.mrb[32].mxu1  ;;  %v2814_v21 = vpop.f32.mrb[28].mxu0 }
0x17fc   :  { %v2896_v22 = vsel %vm5233_vm3, -1e+30, %v2814_v21  ;;  %v4432_v23 = vpop.f32.mrb[33].mxu1  ;;  %v4437_v24 = vpop.f32.mrb[29].mxu0 }
0x17fd   :  { %v2898_v25 = vsel %vm402_vm4, %v2896_v22, -inf }
0x17fe   :  { %2899 = vmax.xlane.f32.xlu0 %v2898_v25 }
0x17ff   :  { %v2892_v26 = vpop.f32.mrb[34].mxu1 }
0x1800   :  { %v2897_v27 = vsel %vm5233_vm3, -1e+30, %v2892_v26  ;;  %v4442_v28 = vpop.f32.mrb[35].mxu1 }
0x1801   :  { %v2901_v29 = vsel %vm402_vm4, %v2897_v27, -inf }
0x1802   :  { %2902 = vmax.xlane.f32.xlu1 %v2901_v29 }
0x1813   :  { %2996 = vrot.lane.b32.xlu1 %v5576_v54, %s4985_s16 }
0x1814   :  { %2920 = vrot.lane.b32.xlu0 %v5570_v60, %s4985_s16 }
0x1817   :  { %3074 = vrot.lane.b32.xlu1 %v5566_v51, %s4986_s12 }
0x181b   :  { %3152 = vrot.lane.b32.xlu1 %v5572_v61, %s4986_s12 }
0x181f   :  { %3150 = vrot.lane.b32.xlu1 %v5572_v61, %s4987_s13 }
0x188b   :  { %v2900_v30 = vpop.xlane.xlu0 %2899 }
0x188c   :  { %v2904_v32 = vsub.f32 %v2896_v22, %v2900_v30 }
0x188e   :  { %v2906_v33 = vmul.f32 1.442695, %v2904_v32 }
0x188f   :  { %v2903_v34 = vpop.xlane.xlu1 %2902  ;;  %v2921_v35 = vpop.permute.xlu0 %2920 }
0x1890   :  { %4818 = vpow2.f32 %v2906_v33  ;;  %v2905_v41 = vsub.f32 %v2897_v27, %v2903_v34  ;;  %4444 = vmatpush3.msra.mxu0 %v2921_v35  ;;  %v4062_v34 = vld [vmem:[%s5892_s5 + $0x48] sm:$0xff]  ;;  %v4063_v35 = vld [vmem:[%s5892_s5 + $0x50] sm:$0xff] }
0x1891   :  { %4453 = vmatprep.subr.mxu0 %v4979_v36 }
0x1892   :  { %v2908_v42 = vmul.f32 1.442695, %v2905_v41 }
0x1893   :  { %v2997_v43 = vpop.permute.xlu1 %2996 }
0x1894   :  { %4820 = vpow2.f32 %v2908_v42  ;;  %4449 = vmatpush3.msra.mxu1 %v2997_v43  ;;  %v4064_v42 = vld [vmem:[%s5892_s5 + $0x58] sm:$0xff] }
0x1895   :  { %4458 = vmatprep.subr.mxu1 %v4979_v36  ;;  %v4665_v43 = vpack.c.bf16 %v4064_v42, %v4063_v35  ;;  %v3575_v35 = vld [vmem:[#allocation7 + $0x70] sm:$0xff] }
0x1897   :  { %v3075_v58 = vpop.permute.xlu1 %3074 }
0x189a   :  { %v4819_v45 = vpop.eup %4818 }
0x189b   :  { %v2910_v46 = vsel %vm402_vm4, %v4819_v45, 0.0  ;;  %v3153_v62 = vpop.permute.xlu1 %3152 }
0x189c   :  { %2911 = vadd.xlane.f32.xlu0 %v2910_v46  ;;  %v4066_v46 = vld [vmem:[%s5892_s5 + $0x68] sm:$0xff] }
0x189e   :  { %v4821_v61 = vpop.eup %4820 }
0x189f   :  { %v2913_v47 = vsel %vm402_vm4, %v4821_v61, 0.0  ;;  %v3151_v5 = vpop.permute.xlu1 %3150 }
0x18a0   :  { %2914 = vadd.xlane.f32.xlu0 %v2913_v47  ;;  %v4067_v47 = vld [vmem:[%s5892_s5 + $0x70] sm:$0xff] }
0x18b6   :  { %3072 = vrot.lane.b32.xlu0 %v5566_v51, %s4987_s13 }
0x1929   :  { %v2912_v53 = vpop.xlane.xlu0 %2911 }
0x192a   :  { %4822 = vrcp.f32 %v2912_v53  ;;  %v4068_v53 = vld [vmem:[%s5892_s5 + $0x78] sm:$0xff] }
0x192d   :  { %v2915_v55 = vpop.xlane.xlu0 %2914 }
0x192e   :  { %4824 = vrcp.f32 %v2915_v55  ;;  %v4673_v55 = vpack.c.bf16 %v4068_v53, %v4067_v47 }
0x1931   :  { %v3073_v51 = vpop.permute.xlu0 %3072 }
0x1934   :  { %v4823_v63 = vpop.eup %4822 }
0x1935   :  { %v2918_v59 = vmul.f32 %v4823_v63, %v4819_v45  ;;  %v4065_v45 = vld [vmem:[%s5892_s5 + $0x60] sm:$0xff] }
0x1937   :  { %4446 = vmatmul.mubr.msk.f32.vlgmr.msra.gmra.mrb[30].mxu0 %vm402_vm4, %v2918_v59 }
0x1938   :  { %v4825_v49 = vpop.eup %4824  ;;  %4454 = vmatpush3.xpose.msk.msra.mxu0 %vm246_vm2, %v3075_v58  ;;  %4455 = vmatprep.mubr.msk.f32.mxu0 %vm4980_vm1, %v4979_v36 }
0x1939   :  { %v2919_v40 = vmul.f32 %v4825_v49, %v4821_v61  ;;  %4463 = vmatprep.subr.mxu0 %v4979_v36  ;;  %v4669_v61 = vpack.c.bf16 %v4066_v46, %v4065_v45 }
0x193b   :  { %4451 = vmatmul.mubr.msk.f32.vlgmr.msra.gmra.mrb[36].mxu1 %vm402_vm4, %v2919_v40  ;;  %4456 = vmatmul.mubr.msk.f32.vlgmr.msra.gmra.mrb[32].mxu0 %vm246_vm2, %v3073_v51 }
0x193c   :  { %4459 = vmatpush3.xpose.msk.msra.mxu1 %vm246_vm2, %v3153_v62  ;;  %4460 = vmatprep.mubr.msk.f32.mxu1 %vm4980_vm1, %v4979_v36 }
0x193d   :  { %4468 = vmatprep.subr.mxu1 %v4979_v36  ;;  %4465 = vmatprep.mubr.msk.f32.mxu0 %vm4980_vm1, %v4979_v36 }
0x193f   :  { %4461 = vmatmul.mubr.msk.f32.vlgmr.msra.gmra.mrb[38].mxu1 %vm246_vm2, %v3151_v5 }
0x1940   :  { %4470 = vmatprep.mubr.msk.f32.mxu1 %vm4980_vm1, %v4979_v36 }
0x1a0a   :  { %v2992_v6 = vpop.f32.mrb[30].mxu0 }
0x1a0b   :  { %v4447_v7 = vpop.f32.mrb[31].mxu0 }
0x1a0e   :  { %v3068_v9 = vpop.f32.mrb[36].mxu1  ;;  %v3146_v10 = vpop.f32.mrb[32].mxu0 }
0x1a0f   :  { %v3228_v11 = vsel %vm5233_vm3, -1e+30, %v3146_v10  ;;  %v4452_v12 = vpop.f32.mrb[37].mxu1  ;;  %v4457_v13 = vpop.f32.mrb[33].mxu0 }
0x1a10   :  { %v3230_v14 = vsel %vm402_vm4, %v3228_v11, -inf }
0x1a11   :  { %3231 = vmax.xlane.f32.xlu0 %v3230_v14 }
0x1a12   :  { %v3224_v15 = vpop.f32.mrb[38].mxu1 }
0x1a13   :  { %v3229_v2 = vsel %vm5233_vm3, -1e+30, %v3224_v15  ;;  %v4462_v16 = vpop.f32.mrb[39].mxu1  ;;  %v5766_v15 = vld [vmem:[#allocation5 + $0x8] sm:$0x7f] }
0x1a14   :  { %v3233_v17 = vsel %vm402_vm4, %v3229_v2, -inf }
0x1a15   :  { %3234 = vmax.xlane.f32.xlu1 %v3233_v17 }
0x1a26   :  { %3328 = vrot.lane.b32.xlu1 %v5576_v54, %s4987_s13 }
0x1a2a   :  { %3406 = vrot.lane.b32.xlu1 %v5668_v20, %s4986_s12 }
0x1a2e   :  { %3408 = vrot.lane.b32.xlu1 %v5670_v3, %s4986_s12 }
0x1a32   :  { %3416 = vrot.lane.b32.xlu1 %v3068_v9, %s4984_s0 }
0x1a9e   :  { %v3232_v18 = vpop.xlane.xlu0 %3231 }
0x1a9f   :  { %v3236_v4 = vsub.f32 %v3228_v11, %v3232_v18 }
0x1aa1   :  { %v3238_v21 = vmul.f32 1.442695, %v3236_v4 }
0x1aa2   :  { %v3235_v8 = vpop.xlane.xlu1 %3234 }
0x1aa3   :  { %4826 = vpow2.f32 %v3238_v21  ;;  %v3237_v22 = vsub.f32 %v3229_v2, %v3235_v8 }
0x1aa5   :  { %v3240_v23 = vmul.f32 1.442695, %v3237_v22 }
0x1aa6   :  { %v3329_v24 = vpop.permute.xlu1 %3328 }
0x1aa7   :  { %4828 = vpow2.f32 %v3240_v23  ;;  %4469 = vmatpush3.msra.mxu1 %v3329_v24 }
0x1aaa   :  { %v3407_v62 = vpop.permute.xlu1 %3406 }
0x1aab   :  { %v3428_v5 = vsel %vm246_vm2, %v5626_v31, %v3407_v62  ;;  %v3446_v31 = vrot.slane %v5766_v15, %v5188_v50 }
0x1aad   :  { %v4827_v25 = vpop.eup %4826 }
0x1aae   :  { %v3242_v54 = vsel %vm402_vm4, %v4827_v25, 0.0  ;;  %v3409_v40 = vpop.permute.xlu1 %3408 }
0x1aaf   :  { %3243 = vadd.xlane.f32.xlu0 %v3242_v54  ;;  %v3429_v11 = vsel %vm246_vm2, %v5628_v0, %v3409_v40 }
0x1ab1   :  { %v4829_v20 = vpop.eup %4828 }
0x1ab2   :  { %v3245_v26 = vsel %vm402_vm4, %v4829_v20, 0.0 }
0x1ab3   :  { %3246 = vadd.xlane.f32.xlu0 %v3245_v26 }
0x1ac9   :  { %3252 = vrot.lane.b32.xlu0 %v5570_v60, %s4987_s13  ;;  %v4061_v60 = vld [vmem:[%s5892_s5 + $0x40] sm:$0xff] }
0x1aca   :  { %v4661_v41 = vpack.c.bf16 %v4062_v34, %v4061_v60  ;;  %v3574_v60 = vld [vmem:[#allocation7 + $0x68] sm:$0xff] }
0x1acd   :  { %3414 = vrot.lane.b32.xlu0 %v2992_v6, %s4984_s0  ;;  %v3417_v6 = vpop.permute.xlu1 %3416 }
0x1ace   :  { %v3431_v12 = vsel %vm1595_vm5, %v3429_v11, %v3417_v6  ;;  %v4076_v11 = vld [vmem:[%s5894_s7 + $0x98] sm:$0xff] }
0x1b3c   :  { %v3244_v3 = vpop.xlane.xlu0 %3243 }
0x1b3d   :  { %4830 = vrcp.f32 %v3244_v3 }
0x1b40   :  { %v3247_v27 = vpop.xlane.xlu0 %3246 }
0x1b41   :  { %4832 = vrcp.f32 %v3247_v27  ;;  %v3570_v27 = vld [vmem:[#allocation7 + $0x48] sm:$0xff] }
0x1b44   :  { %v3253_v28 = vpop.permute.xlu0 %3252 }
0x1b45   :  { %4464 = vmatpush3.msra.mxu0 %v3253_v28 }
0x1b46   :  { %4662 = vmatprep.subr.bf16.mxu0 %v4661_v41 }
0x1b47   :  { %v4831_v29 = vpop.eup %4830 }
0x1b48   :  { %v3250_v30 = vmul.f32 %v4831_v29, %v4827_v25  ;;  %v3415_v51 = vpop.permute.xlu0 %3414  ;;  %v3571_v29 = vld [vmem:[#allocation7 + $0x50] sm:$0xff] }
0x1b49   :  { %v3430_v7 = vsel %vm1595_vm5, %v3428_v5, %v3415_v51 }
0x1b4a   :  { %4466 = vmatmul.mubr.msk.f32.vlgmr.msra.gmra.mrb[34].mxu0 %vm402_vm4, %v3250_v30  ;;  %v3572_v30 = vld [vmem:[#allocation7 + $0x58] sm:$0xff] }
0x1b4b   :  { %v4833_v32 = vpop.eup %4832  ;;  %4664 = vmatpush3.bf16.msra.mxu0 %v4661_v41  ;;  %v3576_v41 = vld [vmem:[#allocation7 + $0x78] sm:$0xff] }
0x1b4c   :  { %v3251_v33 = vmul.f32 %v4833_v32, %v4829_v20  ;;  %4666 = vmatprep.subr.bf16.mxu0 %v4665_v43  ;;  %v4681_v32 = vpack.c.bf16 %v3572_v30, %v3571_v29  ;;  %v4689_v42 = vpack.c.bf16 %v3576_v41, %v3575_v35 }
0x1b4e   :  { %4471 = vmatmul.mubr.msk.f32.vlgmr.msra.gmra.mrb[40].mxu1 %vm402_vm4, %v3251_v33  ;;  %v3573_v33 = vld [vmem:[#allocation7 + $0x60] sm:$0xff] }
0x1b4f   :  { %4668 = vmatpush3.bf16.msra.mxu0 %v4665_v43  ;;  %v4685_v34 = vpack.c.bf16 %v3574_v60, %v3573_v33 }
0x1b50   :  { %4670 = vmatprep.subr.bf16.mxu0 %v4669_v61 }
0x1b53   :  { %4672 = vmatpush3.bf16.msra.mxu0 %v4669_v61 }
0x1b54   :  { %4674 = vmatprep.subr.bf16.mxu0 %v4673_v55 }
0x1b57   :  { %4676 = vmatpush3.bf16.msra.mxu0 %v4673_v55  ;;  %v3559_v55 = vrot.slane %v5766_v15, %v5193_v52 }
0x1c1d   :  { %v3324_v58 = vpop.f32.mrb[34].mxu0 }
0x1c1e   :  { %3422 = vrot.lane.b32.xlu0 %v3324_v58, %s4983_s11  ;;  %v4467_v63 = vpop.f32.mrb[35].mxu0 }
0x1c1f   :  { %v3565_v63 = vrot.slane %v5766_v15, %v1611_v38  ;;  %v4073_v38 = vld [vmem:[%s5894_s7 + $0x80] sm:$0xff] }
0x1c21   :  { %v3400_v59 = vpop.f32.mrb[40].mxu1 }
0x1c22   :  { %3424 = vrot.lane.b32.xlu1 %v3400_v59, %s4983_s11  ;;  %v4472_v49 = vpop.f32.mrb[41].mxu1 }
0x1c90   :  { %v3423_v9 = vpop.permute.xlu0 %3422 }
0x1c91   :  { %v3432_v10 = vsel %vm1598_vm6, %v3430_v7, %v3423_v9  ;;  %v4074_v7 = vld [vmem:[%s5894_s7 + $0x88] sm:$0xff] }
0x1c92   :  { %4489 = vmatprep.mubr.msk.f32.mxu0 %vm104_vm0, %v3432_v10  ;;  %v4693_v9 = vpack.c.bf16 %v4074_v7, %v4073_v38  ;;  %v4075_v10 = vld [vmem:[%s5894_s7 + $0x90] sm:$0xff] }
0x1c94   :  { %v3425_v13 = vpop.permute.xlu1 %3424  ;;  %4694 = vmatprep.subr.bf16.mxu0 %v4693_v9 }
0x1c95   :  { %v3433_v14 = vsel %vm1598_vm6, %v3431_v12, %v3425_v13  ;;  %v4077_v12 = vld [vmem:[%s5894_s7 + $0xa0] sm:$0xff]  ;;  %v4078_v13 = vld [vmem:[%s5894_s7 + $0xa8] sm:$0xff] }
0x1c96   :  { %4490 = vmatmul.mubr.msk.f32.vlgmr.msra.gmra.mrb[36].mxu0 %vm104_vm0, %v3433_v14  ;;  %v4701_v14 = vpack.c.bf16 %v4078_v13, %v4077_v12 }
0x1c97   :  { %4696 = vmatpush3.bf16.msra.mxu0 %v4693_v9 }
0x1d69   :  { %v4491_v2 = vpop.f32.mrb[36].mxu0 }
0x1d6a   :  { %v3525_v16 = vadd.f32 %v4491_v2, %v3446_v31  ;;  %v3519_v17 = vpop.f32.mrb[37].mxu0  ;;  %v4080_v2 = vld [vmem:[%s5894_s7 + $0xb8] sm:$0xff] }
0x1d6b   :  { %v3520_v18 = vadd.f32 %v3519_v17, %v3446_v31  ;;  %v4079_v31 = vld [vmem:[%s5894_s7 + $0xb0] sm:$0xff]  ;;  %v4081_v17 = vld [vmem:[%s5894_s7 + $0xc0] sm:$0xff] }
0x1d6c   :  { %v3529_v4 = vadd.f32 %v3525_v16, %v5496_v56  ;;  %v4705_v16 = vpack.c.bf16 %v4080_v2, %v4079_v31 }
0x1d6d   :  { %v3528_v0 = vadd.f32 %v3520_v18, %v5498_v57  ;;  %v3569_v57 = vld [vmem:[#allocation7 + $0x40] sm:$0xff]  ;;  %v4082_v18 = vld [vmem:[%s5894_s7 + $0xc8] sm:$0xff] }
0x1d6e   :  { %v3533_v21 = vsel %vm104_vm0, %v3529_v4, 0.0  ;;  %v4677_v28 = vpack.c.bf16 %v3570_v27, %v3569_v57 }
0x1d6f   :  { %3534 = vadd.xlane.f32.xlu1 %v3533_v21  ;;  %v3530_v8 = vsel %vm104_vm0, %v3528_v0, 0.0  ;;  %v4084_v21 = vld [vmem:[%s5894_s7 + $0xd8] sm:$0xff] }
0x1d70   :  { %3531 = vadd.xlane.f32.xlu0 %v3530_v8  ;;  %4678 = vmatprep.subr.bf16.mxu1 %v4677_v28 }
0x1d71   :  { %4680 = vmatpush3.bf16.msra.mxu1 %v4677_v28 }
0x1d72   :  { %4682 = vmatprep.subr.bf16.mxu1 %v4681_v32 }
0x1d75   :  { %4684 = vmatpush3.bf16.msra.mxu1 %v4681_v32 }
0x1d76   :  { %4686 = vmatprep.subr.bf16.mxu1 %v4685_v34 }
0x1d79   :  { %4688 = vmatpush3.bf16.msra.mxu1 %v4685_v34 }
0x1d7a   :  { %4690 = vmatprep.subr.bf16.mxu1 %v4689_v42 }
0x1d7d   :  { %4692 = vmatpush3.bf16.msra.mxu1 %v4689_v42 }
0x1dfc   :  { %v3535_v22 = vpop.xlane.xlu1 %3534 }
0x1dfd   :  { %v3537_v23 = vmul.f32 0.015625, %v3535_v22  ;;  %v3532_v24 = vpop.xlane.xlu0 %3531  ;;  %v4085_v22 = vld [vmem:[%s5894_s7 + $0xe0] sm:$0xff] }
0x1dfe   :  { %v3536_v25 = vmul.f32 0.015625, %v3532_v24 }
0x1dff   :  { %v3539_v54 = vsub.f32 %v3529_v4, %v3537_v23  ;;  %v4083_v4 = vld [vmem:[%s5894_s7 + $0xd0] sm:$0xff]  ;;  %v4086_v23 = vld [vmem:[%s5894_s7 + $0xe8] sm:$0xff] }
0x1e00   :  { %v3538_v50 = vsub.f32 %v3528_v0, %v3536_v25  ;;  %v4709_v0 = vpack.c.bf16 %v4082_v18, %v4081_v17  ;;  %v4713_v8 = vpack.c.bf16 %v4084_v21, %v4083_v4  ;;  %v4717_v24 = vpack.c.bf16 %v4086_v23, %v4085_v22  ;;  %v4087_v25 = vld [vmem:[%s5894_s7 + $0xf0] sm:$0xff] }
0x1e01   :  { %v3541_v3 = vmul.f32 %v3539_v54, %v3539_v54  ;;  %v3809_v18 = vrot.slane %v5766_v15, %v1730_v39 }
0x1e02   :  { %v3540_v20 = vmul.f32 %v3538_v50, %v3538_v50 }
0x1e03   :  { %v3545_v56 = vsel %vm104_vm0, %v3541_v3, 0.0 }
0x1e04   :  { %v3542_v26 = vsel %vm104_vm0, %v3540_v20, 0.0  ;;  %v3580_v20 = vrot.slane %v5484_v19, %v5193_v52 }
0x1e05   :  { %3543 = vadd.xlane.f32.xlu0 %v3542_v26 }
0x1e09   :  { %3546 = vadd.xlane.f32.xlu0 %v3545_v56 }
0x1e92   :  { %v3544_v43 = vpop.xlane.xlu0 %3543 }
0x1e93   :  { %v3548_v45 = vmul.f32 0.015625, %v3544_v43 }
0x1e95   :  { %v3550_v46 = vadd.f32 1e-05, %v3548_v45 }
0x1e96   :  { %v3547_v61 = vpop.xlane.xlu0 %3546 }
0x1e97   :  { %4834 = vrsqrt.f32 %v3550_v46  ;;  %v3549_v47 = vmul.f32 0.015625, %v3547_v61 }
0x1e99   :  { %v3551_v53 = vadd.f32 1e-05, %v3549_v47 }
0x1e9b   :  { %4836 = vrsqrt.f32 %v3551_v53  ;;  %v3777_v53 = vrot.slane %v5766_v15, %v1724_v37 }
0x1ea1   :  { %v4835_v58 = vpop.eup %4834 }
0x1ea2   :  { %v3554_v59 = vmul.f32 %v4835_v58, %v3538_v50 }
0x1ea4   :  { %v3560_v49 = vmul.f32 %v3559_v55, %v3554_v59 }
0x1ea5   :  { %v4837_v62 = vpop.eup %4836 }
0x1ea6   :  { %v3555_v40 = vmul.f32 %v4837_v62, %v3539_v54  ;;  %v5781_v51 = vadd.f32 %v3565_v63, %v3560_v49  ;;  %v4088_v54 = vld [vmem:[%s5894_s7 + $0xf8] sm:$0xff] }
0x1ea7   :  { %v4721_v50 = vpack.c.bf16 %v4088_v54, %v4087_v25 }
0x1ea8   :  { %v3561_v5 = vmul.f32 %v3559_v55, %v3555_v40  ;;  %4508 = vmatprep.mubr.msk.f32.mxu1 %vm104_vm0, %v5781_v51 }
0x1eaa   :  { %v5785_v6 = vadd.f32 %v3565_v63, %v3561_v5 }
0x1eac   :  { %4509 = vmatmul.mubr.msk.f32.vlgmr.msra.gmra.mrb[42].mxu1 %vm104_vm0, %v5785_v6 }
0x1ead   :  { %4562 = vmatprep.mubr.msk.f32.mxu1 %vm4980_vm1, %v4979_v36  ;;  %v4697_v36 = vpack.c.bf16 %v4076_v11, %v4075_v10 }
0x1eaf   :  { %4698 = vmatprep.subr.bf16.mxu0 %v4697_v36 }
0x1eb0   :  { %4700 = vmatpush3.bf16.msra.mxu0 %v4697_v36 }
0x1eb1   :  { %4702 = vmatprep.subr.bf16.mxu0 %v4701_v14 }
0x1eb4   :  { %4704 = vmatpush3.bf16.msra.mxu0 %v4701_v14 }
0x1eb5   :  { %4706 = vmatprep.subr.bf16.mxu0 %v4705_v16 }
0x1eb8   :  { %4708 = vmatpush3.bf16.msra.mxu0 %v4705_v16 }
0x1eb9   :  { %4710 = vmatprep.subr.bf16.mxu0 %v4709_v0 }
0x1ebc   :  { %4712 = vmatpush3.bf16.msra.mxu0 %v4709_v0 }
0x1ebd   :  { %4714 = vmatprep.subr.bf16.mxu0 %v4713_v8 }
0x1ec0   :  { %4716 = vmatpush3.bf16.msra.mxu0 %v4713_v8  ;;  %v3815_v8 = vrot.slane %v5766_v15, %v1940_v44 }
0x1ec1   :  { %4718 = vmatprep.subr.bf16.mxu0 %v4717_v24 }
0x1ec4   :  { %4720 = vmatpush3.bf16.msra.mxu0 %v4717_v24  ;;  %v3821_v24 = vrot.slane %v5766_v15, %v1972_v1  ;;  %v3883_v15 = vld [vmem:[#allocation8 + $0x18] sm:$0xff] }
0x1ec5   :  { %4722 = vmatprep.subr.bf16.mxu0 %v4721_v50 }
0x1ec8   :  { %4724 = vmatpush3.bf16.msra.mxu0 %v4721_v50 }
0x1f7f   :  { %v4510_v26 = vpop.f32.mrb[42].mxu1 }
0x1f80   :  { %v3659_v3 = vadd.f32 %v4510_v26, %v3580_v20  ;;  %v3653_v56 = vpop.f32.mrb[43].mxu1 }
0x1f81   :  { %v3654_v57 = vadd.f32 %v3653_v56, %v3580_v20  ;;  %v3881_v56 = vld [vmem:[#allocation8 + $0x8] sm:$0xff] }
0x1f82   :  { %v3663_v27 = vmul.f32 %v3659_v3, %v3659_v3 }
0x1f83   :  { %v3662_v28 = vmul.f32 %v3654_v57, %v3654_v57 }
0x1f84   :  { %v3665_v29 = vmul.f32 %v3663_v27, %v3659_v3  ;;  %v4729_v27 = vpack.c.bf16 %v3883_v15, %v3882_v48 }
0x1f85   :  { %v3664_v30 = vmul.f32 %v3662_v28, %v3654_v57  ;;  %v3884_v28 = vld [vmem:[#allocation8 + $0x20] sm:$0xff] }
0x1f86   :  { %v3667_v32 = vmul.f32 0.044715, %v3665_v29  ;;  %v3885_v29 = vld [vmem:[#allocation8 + $0x28] sm:$0xff] }
0x1f87   :  { %v3666_v33 = vmul.f32 0.044715, %v3664_v30  ;;  %v4732_v30 = vpack.c.bf16 %v3885_v29, %v3884_v28 }
0x1f88   :  { %v3669_v60 = vadd.f32 %v3667_v32, %v3659_v3  ;;  %v3886_v32 = vld [vmem:[#allocation8 + $0x30] sm:$0xff] }
0x1f89   :  { %v3668_v34 = vadd.f32 %v3666_v33, %v3654_v57  ;;  %v3887_v33 = vld [vmem:[#allocation8 + $0x38] sm:$0xff] }
0x1f8a   :  { %v3671_v35 = vmul.f32 0.7978846, %v3669_v60  ;;  %v4735_v60 = vpack.c.bf16 %v3887_v33, %v3886_v32 }
0x1f8b   :  { %v3670_v41 = vmul.f32 0.7978846, %v3668_v34 }
0x1f8c   :  { %4838 = vtanh.f32 %v3671_v35 }
0x1f8d   :  { %4840 = vtanh.f32 %v3670_v41 }
0x1f96   :  { %v4839_v42 = vpop.eup %4838 }
0x1f97   :  { %v4841_v43 = vpop.eup %4840  ;;  %v3675_v45 = vadd.f32 1.0, %v4839_v42 }
0x1f98   :  { %v3674_v52 = vadd.f32 1.0, %v4841_v43 }
0x1f99   :  { %v3677_v19 = vmul.f32 0.5, %v3675_v45 }
0x1f9a   :  { %v3676_v46 = vmul.f32 0.5, %v3674_v52 }
0x1f9b   :  { %v3679_v47 = vmul.f32 %v3677_v19, %v3659_v3  ;;  %v3880_v3 = vld [vmem:[#allocation8] sm:$0xff] }
0x1f9c   :  { %v3678_v61 = vmul.f32 %v3676_v46, %v3654_v57  ;;  %v4988_v57 = vmov 0.0|0.0   ;;  %v4726_v1 = vpack.c.bf16 %v3881_v56, %v3880_v3 }
0x1f9d   :  { %4725 = vmatprep.subr.bf16.mxu1 %v4988_v57 }
0x1f9e   :  { %4543 = vmatprep.mubr.f32.mxu0 %v3678_v61  ;;  %4727 = vmatpush3.bf16.msra.mxu1 %v4726_v1 }
0x1f9f   :  { %4544 = vmatmul.mubr.f32.vlgmr.msra.gmra.mrb[38].mxu0 %v3679_v47  ;;  %4728 = vmatprep.subr.bf16.mxu1 %v4988_v57 }
0x1fa2   :  { %4730 = vmatpush3.bf16.msra.mxu1 %v4729_v27 }
0x1fa3   :  { %4731 = vmatprep.subr.bf16.mxu1 %v4988_v57 }
0x1fa6   :  { %4733 = vmatpush3.bf16.msra.mxu1 %v4732_v30 }
0x1fa7   :  { %4734 = vmatprep.subr.bf16.mxu1 %v4988_v57 }
0x1faa   :  { %4736 = vmatpush3.bf16.msra.mxu1 %v4735_v60 }
0x2072   :  { %v4545_v55 = vpop.f32.mrb[38].mxu0 }
0x2073   :  { %v3773_v58 = vadd.f32 %v4545_v55, %v5785_v6  ;;  %v3763_v63 = vpop.f32.mrb[39].mxu0 }
0x2074   :  { %v3772_v59 = vadd.f32 %v3763_v63, %v5781_v51 }
0x2075   :  { %v3779_v49 = vadd.f32 %v3777_v53, %v3773_v58 }
0x2076   :  { %v3778_v62 = vadd.f32 %v3777_v53, %v3772_v59 }
0x2077   :  { %v3783_v40 = vsel %vm104_vm0, %v3779_v49, 0.0 }
0x2078   :  { %3784 = vadd.xlane.f32.xlu1 %v3783_v40  ;;  %v3780_v5 = vsel %vm104_vm0, %v3778_v62, 0.0 }
0x2079   :  { %3781 = vadd.xlane.f32.xlu0 %v3780_v5 }
0x2105   :  { %v3785_v38 = vpop.xlane.xlu1 %3784 }
0x2106   :  { %v3787_v7 = vmul.f32 0.015625, %v3785_v38  ;;  %v3782_v9 = vpop.xlane.xlu0 %3781 }
0x2107   :  { %v3786_v10 = vmul.f32 0.015625, %v3782_v9 }
0x2108   :  { %v3789_v11 = vsub.f32 %v3779_v49, %v3787_v7 }
0x2109   :  { %v3788_v37 = vsub.f32 %v3778_v62, %v3786_v10 }
0x210a   :  { %v3791_v36 = vmul.f32 %v3789_v11, %v3789_v11 }
0x210b   :  { %v3790_v12 = vmul.f32 %v3788_v37, %v3788_v37 }
0x210c   :  { %v3795_v6 = vsel %vm104_vm0, %v3791_v36, 0.0 }
0x210d   :  { %3796 = vadd.xlane.f32.xlu1 %v3795_v6  ;;  %v3792_v51 = vsel %vm104_vm0, %v3790_v12, 0.0 }
0x210e   :  { %3793 = vadd.xlane.f32.xlu0 %v3792_v51 }
0x219a   :  { %v3797_v13 = vpop.xlane.xlu1 %3796 }
0x219b   :  { %v3799_v14 = vmul.f32 0.015625, %v3797_v13  ;;  %v3794_v31 = vpop.xlane.xlu0 %3793 }
0x219c   :  { %v3798_v2 = vmul.f32 0.015625, %v3794_v31 }
0x219d   :  { %v3801_v16 = vadd.f32 1e-05, %v3799_v14 }
0x219e   :  { %v3800_v17 = vadd.f32 1e-05, %v3798_v2 }
0x219f   :  { %4842 = vrsqrt.f32 %v3801_v16 }
0x21a0   :  { %4844 = vrsqrt.f32 %v3800_v17 }
0x21a9   :  { %v4843_v4 = vpop.eup %4842 }
0x21aa   :  { %v4845_v0 = vpop.eup %4844  ;;  %v3805_v21 = vmul.f32 %v4843_v4, %v3789_v11 }
0x21ab   :  { %v3804_v22 = vmul.f32 %v4845_v0, %v3788_v37 }
0x21ac   :  { %v3811_v23 = vmul.f32 %v3809_v18, %v3805_v21 }
0x21ad   :  { %v3810_v25 = vmul.f32 %v3809_v18, %v3804_v22 }
0x21ae   :  { %v5859_v54 = vadd.f32 %v3815_v8, %v3811_v23 }
0x21af   :  { %v5861_v50 = vadd.f32 %v3815_v8, %v3810_v25 }
0x21b0   :  { %v3823_v39 = vmul.f32 %v3821_v24, %v5859_v54 }
0x21b1   :  { %v3822_v20 = vmul.f32 %v3821_v24, %v5861_v50 }
0x21b2   :  { %v3827_v26 = vsel %vm104_vm0, %v3823_v39, 0.0 }
0x21b3   :  { %3828 = vadd.xlane.f32.xlu1 %v3827_v26  ;;  %v3824_v44 = vsel %vm104_vm0, %v3822_v20, 0.0 }
0x21b4   :  { %3825 = vadd.xlane.f32.xlu0 %v3824_v44 }
0x2240   :  { %v3829_v34 = vpop.xlane.xlu1 %3828 }
0x2241   :  { %v3836_v35 = vrot.slane %v3829_v34, 4  ;;  %v3826_v41 = vpop.xlane.xlu0 %3825 }
0x2242   :  { %v3830_v42 = vrot.slane %v3826_v41, 4 }
0x2243   :  { %v3837_v43 = vmax.f32 %v3829_v34, %v3836_v35 }
0x2244   :  { %v3831_v45 = vmax.f32 %v3826_v41, %v3830_v42 }
0x2245   :  { %v3838_v52 = vrot.slane %v3837_v43, 2 }
0x2246   :  { %v3832_v19 = vrot.slane %v3831_v45, 2 }
0x2247   :  { %v3839_v46 = vmax.f32 %v3837_v43, %v3838_v52 }
0x2248   :  { %v3833_v61 = vmax.f32 %v3831_v45, %v3832_v19 }
0x2249   :  { %v3840_v47 = vrot.slane %v3839_v46, 1 }
0x224a   :  { %v3834_v53 = vrot.slane %v3833_v61, 1 }
0x224b   :  { %v3841_v55 = vmax.f32 %v3839_v46, %v3840_v47 }
0x224c   :  { %v3835_v58 = vmax.f32 %v3833_v61, %v3834_v53 }
0x224d   :  { %v3843_v63 = vsub.f32 %v3829_v34, %v3841_v55 }
0x224e   :  { %v3842_v59 = vsub.f32 %v3826_v41, %v3835_v58 }
0x224f   :  { %v3846_v49 = vmul.f32 1.442695, %v3843_v63 }
0x2250   :  { %v3844_v62 = vmul.f32 1.442695, %v3842_v59 }
0x2251   :  { %4846 = vpow2.f32 %v3846_v49 }
0x2252   :  { %4848 = vpow2.f32 %v3844_v62 }
0x225b   :  { %v4847_v40 = vpop.eup %4846 }
0x225c   :  { %v4849_v5 = vpop.eup %4848  ;;  %v3854_v38 = vrot.slane %v4847_v40, 4 }
0x225d   :  { %v3848_v7 = vrot.slane %v4849_v5, 4 }
0x225e   :  { %v3855_v9 = vadd.f32 %v4847_v40, %v3854_v38 }
0x225f   :  { %v3849_v10 = vadd.f32 %v4849_v5, %v3848_v7 }
0x2260   :  { %v3856_v11 = vrot.slane %v3855_v9, 2 }
0x2261   :  { %v3850_v37 = vrot.slane %v3849_v10, 2 }
0x2262   :  { %v3857_v36 = vadd.f32 %v3856_v11, %v3855_v9 }
0x2263   :  { %v3851_v12 = vadd.f32 %v3850_v37, %v3849_v10 }
0x2264   :  { %v3858_v6 = vrot.slane %v3857_v36, 1 }
0x2265   :  { %v3852_v51 = vrot.slane %v3851_v12, 1 }
0x2266   :  { %v3859_v13 = vadd.f32 %v3858_v6, %v3857_v36 }
0x2267   :  { %v3853_v14 = vadd.f32 %v3852_v51, %v3851_v12 }
0x2268   :  { %4850 = vrcp.f32 %v3859_v13 }
0x2269   :  { %4852 = vrcp.f32 %v3853_v14 }
0x2272   :  { %v4851_v31 = vpop.eup %4850 }
0x2273   :  { %v4853_v2 = vpop.eup %4852  ;;  %v3863_v16 = vmul.f32 %v4851_v31, %v4847_v40 }
0x2274   :  { %v3862_v17 = vmul.f32 %v4853_v2, %v4849_v5 }
0x2275   :  { %v3865_v18 = vmul.f32 %v3863_v16, %v5859_v54 }
0x2276   :  { %v3864_v4 = vmul.f32 %v3862_v17, %v5861_v50  ;;  %v4089_v50 = vld [vmem:[%s5896_s9] ss:$0 sm:$0xff] }
0x2277   :  { %v3873_v0 = vsel %vm104_vm0, %v3865_v18, 0.0 }
0x2278   :  { %v3866_v21 = vsel %vm104_vm0, %v3864_v4, 0.0  ;;  %v3874_v8 = vrot.slane %v3873_v0, 4 }
0x2279   :  { %v3867_v22 = vrot.slane %v3866_v21, 4 }
0x227a   :  { %v3875_v23 = vadd.f32 %v3874_v8, %v3873_v0 }
0x227b   :  { %v3868_v24 = vadd.f32 %v3867_v22, %v3866_v21 }
0x227c   :  { %v3876_v25 = vrot.slane %v3875_v23, 2 }
0x227d   :  { %v3869_v39 = vrot.slane %v3868_v24, 2 }
0x227e   :  { %v3877_v20 = vadd.f32 %v3876_v25, %v3875_v23 }
0x227f   :  { %v3870_v26 = vadd.f32 %v3869_v39, %v3868_v24 }
0x2280   :  { %v3878_v44 = vrot.slane %v3877_v20, 1 }
0x2281   :  { %v3871_v3 = vrot.slane %v3870_v26, 1 }
0x2282   :  { %v3879_v56 = vadd.f32 %v3878_v44, %v3877_v20 }
0x2283   :  { %v3872_v48 = vadd.f32 %v3871_v3, %v3870_v26 }
0x2285   :  { %v3898_v54 = vsel %vm3897_vm7, %v3879_v56, %v3872_v48 }
0x2286   :  { %4563 = vmatmul.mubr.msk.f32.vlgmr.msra.gmra.mrb[44].mxu1 %vm104_vm0, %v3898_v54 }
0x2359   :  { %v3967_v57 = vpop.f32.mrb[44].mxu1 }
0x235a   :  { %v3968_v1 = vadd.f32 %v4089_v50, %v3967_v57  ;;  %v4564_v15 = vpop.f32.mrb[45].mxu1 }
0x235c   :  { %3971 = vst [vmem:[#allocation10] sm:$0x3] %v3968_v1 }
0x235d   :  { %4954 = shalt.err (!%p4951_p8)
}
0x235e   :  { %s4955_s21 = scalar_lea.hbm %s5897_s10, 32 }
0x235f   :  { %p4956_p9 = scmp.ne.s32.totalorder %s5897_s10, %s4955_s21  ;;  %p4959_p10 = scmp.lt.u32.totalorder %s4955_s21, %s5897_s10 }
0x2361   :  { %p4961_p11 = pnand %p4959_p10, %p4956_p9 }
0x2363   :  { %4964 = shalt.err (!%p4961_p11)
}
0x2364   :  { %3981 = dma.vmem_to_hbm [thread:$0]  %s3979_s18, 32, %s5897_s10, [#allocation4]  }
0x2365   :  { %4971 = dma.done.wait [#allocation4], 32  }
0x2366   :  { %4972 = vsyncadd [#allocation4], 4294967264 }
0x2367   :  { %3985 = vsyncpa [#allocation3], 1 }
0x2368   :  { %3986 = vsyncpa [#allocation6], 1 }
0x2369   :  { %3987 = vsyncpa [#allocation9], 1 }
0x236a   :  { %3988 = vsyncpa [#allocation4], 1 }

</bundles_post_ra>
